<compile_context>
chip_gen: v6e
topology: v6e:2x2x1
jax: 0.10.0
libtpu: 0.0.40
codegen_flags: <defaults>
</compile_context>

<pallas_src>
import functools

import numpy as np

import jax
import jax.numpy as jnp
from jax.experimental import pallas as pl
from jax.experimental.pallas import tpu as pltpu


# ---------------- in-kernel building blocks ---------------------------------

def _conv3x3(x, mask_ref, patch_ref, w_ref, b_ref, w_img, act):
    """3x3 / stride-1 / pad-1 conv on one flat image as a single MXU matmul.

    x:         (C_in, HW) f32 value; flat row-major spatial axis on lanes.
    mask_ref:  (9, HW) f32 tap-validity masks for this resolution.
    patch_ref: (>=9*C_in, >=HW) bf16 VMEM scratch, shared across layers.
    w_ref:     (C_out, 9*C_in) bf16 flattened weights, columns ordered (kh,kw,c).
    b_ref:     (C_out, 1) f32 bias.
    w_img:     image width (flat-lane stride of one image row).
    returns:   (C_out, HW) f32 value.
    """
    c_in, hw = x.shape

    # Build the im2col patch matrix with XLU rolls + VPU masks (no pad buffer,
    # no reshapes): tap (kh, kw) at pixel p is x[p + (kh-1)*W + (kw-1)] when the
    # shifted position is inside the image, else 0.
    for kh in range(3):
        for kw in range(3):
            t = kh * 3 + kw
            s = (kh - 1) * w_img + (kw - 1)              # flat offset of this tap
            if s == 0:
                tap = x                                   # centre tap: all valid
            else:
                tap = pltpu.roll(x, shift=(-s) % hw, axis=1)
                tap = tap * mask_ref[pl.ds(t, 1), :]      # zero out wrapped pixels
            patch_ref[pl.ds(t * c_in, c_in), pl.ds(0, hw)] = tap.astype(jnp.bfloat16)

    patch = patch_ref[pl.ds(0, 9 * c_in), pl.ds(0, hw)]   # (9*C_in, HW) bf16
    acc = jnp.dot(w_ref[...], patch,
                  preferred_element_type=jnp.float32) + b_ref[...]
    if act == "relu":
        return jnp.maximum(acc, 0.0)
    return jnp.tanh(acc)


def _generator_kernel(x_ref, mfull_ref, mhalf_ref,
                      w1_ref, b1_ref, w2_ref, b2_ref,
                      w3_ref, b3_ref, w4_ref, b4_ref,
                      pool_ref, up_ref, o_ref, patch_ref, *, W):
    """Whole Encoder -> Decoder forward for one batch element, fully in VMEM."""
    Wh = W // 2
    x = x_ref[0]                                                   # (c_in, H*W) f32

    # ---- Encoder ----
    a1 = _conv3x3(x, mfull_ref, patch_ref, w1_ref, b1_ref, W, "relu")   # (c_mid, HW)
    a1p = jnp.dot(a1.astype(jnp.bfloat16), pool_ref[...],
                  preferred_element_type=jnp.float32)                   # (c_mid, HhWh)
    a2 = _conv3x3(a1p, mhalf_ref, patch_ref, w2_ref, b2_ref, Wh, "relu")  # (c_lat, HhWh)

    # ---- Decoder ----
    a2u = jnp.dot(a2.astype(jnp.bfloat16), up_ref[...],
                  preferred_element_type=jnp.float32)                   # (c_lat, HW)
    a3 = _conv3x3(a2u, mfull_ref, patch_ref, w3_ref, b3_ref, W, "relu") # (c_mid, HW)
    a4 = _conv3x3(a3, mfull_ref, patch_ref, w4_ref, b4_ref, W, "tanh")  # (c_in, HW)

    o_ref[0] = a4


# ---------------- trace-time constant builders -------------------------------

def _tap_masks(h_img, w_img):
    """(9, H*W) f32 validity masks for the 9 taps of a 3x3 / pad-1 conv."""
    hw = h_img * w_img
    p = np.arange(hw)
    h, w = p // w_img, p % w_img
    m = np.zeros((9, hw), np.float32)
    for kh in range(3):
        for kw in range(3):
            dh, dw = kh - 1, kw - 1
            m[kh * 3 + kw] = ((h + dh >= 0) & (h + dh < h_img) &
                              (w + dw >= 0) & (w + dw < w_img))
    return jnp.asarray(m)


def _pool_up_mats(h_img, w_img):
    """2x2 avg-pool and nearest-2x upsample as small constant bf16 matrices."""
    hh, wh = h_img // 2, w_img // 2
    ii = np.arange(h_img * w_img)
    jj = np.arange(hh * wh)
    hit = (((ii[:, None] // w_img) // 2 == jj[None, :] // wh) &
           ((ii[:, None] % w_img) // 2 == jj[None, :] % wh))
    pool = jnp.asarray(0.25 * hit, jnp.bfloat16)     # (H*W, Hh*Wh)
    up = jnp.asarray(hit.T, jnp.bfloat16)            # (Hh*Wh, H*W)
    return pool, up


# ---------------- parameter construction (deterministic, in-script) ---------

def _conv_params(key, c_in, c_out):
    wk, bk = jax.random.split(key)
    fan_in = 9 * c_in
    scale = (2.0 / fan_in) ** 0.5
    w = scale * jax.random.normal(wk, (3, 3, c_in, c_out), jnp.float32)
    b = 0.01 * jax.random.normal(bk, (c_out,), jnp.float32)
    return w, b


def init_generator_params(key, c_in=4, c_mid=16, c_lat=32):
    k1, k2, k3, k4 = jax.random.split(key, 4)
    return {
        "enc1": _conv_params(k1, c_in, c_mid),    # Encoder conv 1
        "enc2": _conv_params(k2, c_mid, c_lat),   # Encoder conv 2 (post-pool)
        "dec1": _conv_params(k3, c_lat, c_mid),   # Decoder conv 1 (post-upsample)
        "dec2": _conv_params(k4, c_mid, c_in),    # Decoder output conv
    }


# ---------------- Generator forward ------------------------------------------

def generator_forward(params, x_nchw):
    """Encoder -> Decoder fused into one Pallas kernel.  I/O is NCHW."""
    N, c_in, H, W = x_nchw.shape
    HW, HWh = H * W, (H // 2) * (W // 2)

    w1, b1 = params["enc1"]
    w2, b2 = params["enc2"]
    w3, b3 = params["dec1"]
    w4, b4 = params["dec2"]
    c_mid, c_lat = w1.shape[-1], w2.shape[-1]

    def wflat(w):   # (3,3,Cin,Cout) -> (Cout, 9*Cin), columns ordered (kh,kw,c)
        return w.reshape(-1, w.shape[-1]).T.astype(jnp.bfloat16)

    def bcol(b):    # (Cout,) -> (Cout, 1) f32
        return b.reshape(-1, 1).astype(jnp.float32)

    masks_full = _tap_masks(H, W)
    masks_half = _tap_masks(H // 2, W // 2)
    pool_mat, up_mat = _pool_up_mats(H, W)

    # NCHW -> (N, C, H*W) is a free reshape: the kernel layout IS NCHW-flat.
    x_flat = x_nchw.reshape(N, c_in, HW)

    kernel = functools.partial(_generator_kernel, W=W)

    def full(shape):
        return pl.BlockSpec(shape, lambda n: (0,) * len(shape))

    y_flat = pl.pallas_call(
        kernel,
        out_shape=jax.ShapeDtypeStruct((N, c_in, HW), jnp.float32),
        grid=(N,),
        in_specs=[
            pl.BlockSpec((1, c_in, HW), lambda n: (n, 0, 0)),       # x (one image)
            full((9, HW)), full((9, HWh)),                          # tap masks
            full((c_mid, 9 * c_in)), full((c_mid, 1)),              # enc1
            full((c_lat, 9 * c_mid)), full((c_lat, 1)),             # enc2
            full((c_mid, 9 * c_lat)), full((c_mid, 1)),             # dec1
            full((c_in, 9 * c_mid)), full((c_in, 1)),               # dec2
            full((HW, HWh)),                                        # pool matrix
            full((HWh, HW)),                                        # upsample matrix
        ],
        out_specs=pl.BlockSpec((1, c_in, HW), lambda n: (n, 0, 0)),
        scratch_shapes=[pltpu.VMEM((9 * c_lat, HW), jnp.bfloat16)],  # shared patch
        compiler_params=pltpu.CompilerParams(
            dimension_semantics=("parallel",),
            vmem_limit_bytes=32 * 1024 * 1024),
    )(x_flat, masks_full, masks_half,
      wflat(w1), bcol(b1), wflat(w2), bcol(b2),
      wflat(w3), bcol(b3), wflat(w4), bcol(b4),
      pool_mat, up_mat)

    # (N, C, H*W) -> NCHW (free reshape, no transpose).
    return y_flat.reshape(N, c_in, H, W)


if __name__ == "__main__":
    key = jax.random.PRNGKey(0)
    x_key, p_key = jax.random.split(key)

    # Small NCHW input: batch=2, channels=4, spatial=16x16.
    x = jax.random.normal(x_key, (2, 4, 16, 16), jnp.float32)
    params = init_generator_params(p_key, c_in=4, c_mid=16, c_lat=32)

    y = jax.jit(generator_forward)(params, x)
    y = jax.block_until_ready(y)

    assert y.shape == (2, 4, 16, 16), y.shape
    assert bool(jnp.all(jnp.isfinite(y)))
    print("KERNEL_OK")
</pallas_src>

<mosaic_0001>
module attributes {stable_mosaic.version = 11 : i64} {
  func.func @_generator_kernel(%arg0: i32, %arg1: memref<1x4x256xf32, #tpu.memory_space<vmem>>, %arg2: memref<9x256xf32, #tpu.memory_space<vmem>>, %arg3: memref<9x64xf32, #tpu.memory_space<vmem>>, %arg4: memref<16x36xbf16, #tpu.memory_space<vmem>>, %arg5: memref<16x1xf32, #tpu.memory_space<vmem>>, %arg6: memref<32x144xbf16, #tpu.memory_space<vmem>>, %arg7: memref<32x1xf32, #tpu.memory_space<vmem>>, %arg8: memref<16x288xbf16, #tpu.memory_space<vmem>>, %arg9: memref<16x1xf32, #tpu.memory_space<vmem>>, %arg10: memref<4x144xbf16, #tpu.memory_space<vmem>>, %arg11: memref<4x1xf32, #tpu.memory_space<vmem>>, %arg12: memref<256x64xbf16, #tpu.memory_space<vmem>>, %arg13: memref<64x256xbf16, #tpu.memory_space<vmem>>, %arg14: memref<1x4x256xf32, #tpu.memory_space<vmem>>, %arg15: memref<288x256xbf16, #tpu.memory_space<vmem>>) attributes {dimension_semantics = [#tpu.dimension_semantics<parallel>], iteration_bounds = array<i64: 2>, scalar_prefetch = 0 : i64, scratch_operands = 1 : i64, tpu.core_type = #tpu.core_type<tc>, window_params = [{transform_indices = @transform_0, window_bounds = array<i64: 1, 4, 256>}, {pipeline_mode = #tpu.pipeline_mode<synchronous>, transform_indices = @transform_1, window_bounds = array<i64: 9, 256>}, {pipeline_mode = #tpu.pipeline_mode<synchronous>, transform_indices = @transform_2, window_bounds = array<i64: 9, 64>}, {pipeline_mode = #tpu.pipeline_mode<synchronous>, transform_indices = @transform_3, window_bounds = array<i64: 16, 36>}, {pipeline_mode = #tpu.pipeline_mode<synchronous>, transform_indices = @transform_4, window_bounds = array<i64: 16, 1>}, {pipeline_mode = #tpu.pipeline_mode<synchronous>, transform_indices = @transform_5, window_bounds = array<i64: 32, 144>}, {pipeline_mode = #tpu.pipeline_mode<synchronous>, transform_indices = @transform_6, window_bounds = array<i64: 32, 1>}, {pipeline_mode = #tpu.pipeline_mode<synchronous>, transform_indices = @transform_7, window_bounds = array<i64: 16, 288>}, {pipeline_mode = #tpu.pipeline_mode<synchronous>, transform_indices = @transform_8, window_bounds = array<i64: 16, 1>}, {pipeline_mode = #tpu.pipeline_mode<synchronous>, transform_indices = @transform_9, window_bounds = array<i64: 4, 144>}, {pipeline_mode = #tpu.pipeline_mode<synchronous>, transform_indices = @transform_10, window_bounds = array<i64: 4, 1>}, {pipeline_mode = #tpu.pipeline_mode<synchronous>, transform_indices = @transform_11, window_bounds = array<i64: 256, 64>}, {pipeline_mode = #tpu.pipeline_mode<synchronous>, transform_indices = @transform_12, window_bounds = array<i64: 64, 256>}, {transform_indices = @transform_13, window_bounds = array<i64: 1, 4, 256>}]} {
    %c0 = arith.constant 0 : index
    %c0_0 = arith.constant 0 : index
    %c0_1 = arith.constant 0 : index
    %0 = vector.load %arg1[%c0, %c0_0, %c0_1] : memref<1x4x256xf32, #tpu.memory_space<vmem>>, vector<1x4x256xf32>
    %1 = vector.shape_cast %0 : vector<1x4x256xf32> to vector<4x256xf32>
    %c17_i32 = arith.constant 17 : i32
    %2 = tpu.dynamic_rotate %1 by %c17_i32 dim 1 : vector<4x256xf32>, i32 -> vector<4x256xf32>
    %c0_2 = arith.constant 0 : index
    %c0_3 = arith.constant 0 : index
    %3 = vector.load %arg2[%c0_2, %c0_3] : memref<9x256xf32, #tpu.memory_space<vmem>>, vector<1x256xf32>
    %4 = vector.broadcast %3 : vector<1x256xf32> to vector<4x256xf32>
    %5 = arith.mulf %2, %4 : vector<4x256xf32>
    %6 = arith.truncf %5 : vector<4x256xf32> to vector<4x256xbf16>
    %c0_4 = arith.constant 0 : index
    %c0_5 = arith.constant 0 : index
    %7 = vector.load %arg15[%c0_4, %c0_5] : memref<288x256xbf16, #tpu.memory_space<vmem>>, vector<4x256xbf16>
    tpu.vector_store %arg15[%c0_4, %c0_5], %6 {strides = array<i32>} : memref<288x256xbf16, #tpu.memory_space<vmem>>, vector<4x256xbf16>,
    %c16_i32 = arith.constant 16 : i32
    %8 = tpu.dynamic_rotate %1 by %c16_i32 dim 1 : vector<4x256xf32>, i32 -> vector<4x256xf32>
    %c1 = arith.constant 1 : index
    %c0_6 = arith.constant 0 : index
    %9 = vector.load %arg2[%c1, %c0_6] : memref<9x256xf32, #tpu.memory_space<vmem>>, vector<1x256xf32>
    %10 = vector.broadcast %9 : vector<1x256xf32> to vector<4x256xf32>
    %11 = arith.mulf %8, %10 : vector<4x256xf32>
    %12 = arith.truncf %11 : vector<4x256xf32> to vector<4x256xbf16>
    %c4 = arith.constant 4 : index
    %c0_7 = arith.constant 0 : index
    %13 = vector.load %arg15[%c4, %c0_7] : memref<288x256xbf16, #tpu.memory_space<vmem>>, vector<4x256xbf16>
    tpu.vector_store %arg15[%c4, %c0_7], %12 {strides = array<i32>} : memref<288x256xbf16, #tpu.memory_space<vmem>>, vector<4x256xbf16>,
    %c15_i32 = arith.constant 15 : i32
    %14 = tpu.dynamic_rotate %1 by %c15_i32 dim 1 : vector<4x256xf32>, i32 -> vector<4x256xf32>
    %c2 = arith.constant 2 : index
    %c0_8 = arith.constant 0 : index
    %15 = vector.load %arg2[%c2, %c0_8] : memref<9x256xf32, #tpu.memory_space<vmem>>, vector<1x256xf32>
    %16 = vector.broadcast %15 : vector<1x256xf32> to vector<4x256xf32>
    %17 = arith.mulf %14, %16 : vector<4x256xf32>
    %18 = arith.truncf %17 : vector<4x256xf32> to vector<4x256xbf16>
    %c8 = arith.constant 8 : index
    %c0_9 = arith.constant 0 : index
    %19 = vector.load %arg15[%c8, %c0_9] : memref<288x256xbf16, #tpu.memory_space<vmem>>, vector<4x256xbf16>
    tpu.vector_store %arg15[%c8, %c0_9], %18 {strides = array<i32>} : memref<288x256xbf16, #tpu.memory_space<vmem>>, vector<4x256xbf16>,
    %c1_i32 = arith.constant 1 : i32
    %20 = tpu.dynamic_rotate %1 by %c1_i32 dim 1 : vector<4x256xf32>, i32 -> vector<4x256xf32>
    %c3 = arith.constant 3 : index
    %c0_10 = arith.constant 0 : index
    %21 = vector.load %arg2[%c3, %c0_10] : memref<9x256xf32, #tpu.memory_space<vmem>>, vector<1x256xf32>
    %22 = vector.broadcast %21 : vector<1x256xf32> to vector<4x256xf32>
    %23 = arith.mulf %20, %22 : vector<4x256xf32>
    %24 = arith.truncf %23 : vector<4x256xf32> to vector<4x256xbf16>
    %c12 = arith.constant 12 : index
    %c0_11 = arith.constant 0 : index
    %25 = vector.load %arg15[%c12, %c0_11] : memref<288x256xbf16, #tpu.memory_space<vmem>>, vector<4x256xbf16>
    tpu.vector_store %arg15[%c12, %c0_11], %24 {strides = array<i32>} : memref<288x256xbf16, #tpu.memory_space<vmem>>, vector<4x256xbf16>,
    %26 = arith.truncf %1 : vector<4x256xf32> to vector<4x256xbf16>
    %c16 = arith.constant 16 : index
    %c0_12 = arith.constant 0 : index
    %27 = vector.load %arg15[%c16, %c0_12] : memref<288x256xbf16, #tpu.memory_space<vmem>>, vector<4x256xbf16>
    tpu.vector_store %arg15[%c16, %c0_12], %26 {strides = array<i32>} : memref<288x256xbf16, #tpu.memory_space<vmem>>, vector<4x256xbf16>,
    %c255_i32 = arith.constant 255 : i32
    %28 = tpu.dynamic_rotate %1 by %c255_i32 dim 1 : vector<4x256xf32>, i32 -> vector<4x256xf32>
    %c5 = arith.constant 5 : index
    %c0_13 = arith.constant 0 : index
    %29 = vector.load %arg2[%c5, %c0_13] : memref<9x256xf32, #tpu.memory_space<vmem>>, vector<1x256xf32>
    %30 = vector.broadcast %29 : vector<1x256xf32> to vector<4x256xf32>
    %31 = arith.mulf %28, %30 : vector<4x256xf32>
    %32 = arith.truncf %31 : vector<4x256xf32> to vector<4x256xbf16>
    %c20 = arith.constant 20 : index
    %c0_14 = arith.constant 0 : index
    %33 = vector.load %arg15[%c20, %c0_14] : memref<288x256xbf16, #tpu.memory_space<vmem>>, vector<4x256xbf16>
    tpu.vector_store %arg15[%c20, %c0_14], %32 {strides = array<i32>} : memref<288x256xbf16, #tpu.memory_space<vmem>>, vector<4x256xbf16>,
    %c241_i32 = arith.constant 241 : i32
    %34 = tpu.dynamic_rotate %1 by %c241_i32 dim 1 : vector<4x256xf32>, i32 -> vector<4x256xf32>
    %c6 = arith.constant 6 : index
    %c0_15 = arith.constant 0 : index
    %35 = vector.load %arg2[%c6, %c0_15] : memref<9x256xf32, #tpu.memory_space<vmem>>, vector<1x256xf32>
    %36 = vector.broadcast %35 : vector<1x256xf32> to vector<4x256xf32>
    %37 = arith.mulf %34, %36 : vector<4x256xf32>
    %38 = arith.truncf %37 : vector<4x256xf32> to vector<4x256xbf16>
    %c24 = arith.constant 24 : index
    %c0_16 = arith.constant 0 : index
    %39 = vector.load %arg15[%c24, %c0_16] : memref<288x256xbf16, #tpu.memory_space<vmem>>, vector<4x256xbf16>
    tpu.vector_store %arg15[%c24, %c0_16], %38 {strides = array<i32>} : memref<288x256xbf16, #tpu.memory_space<vmem>>, vector<4x256xbf16>,
    %c240_i32 = arith.constant 240 : i32
    %40 = tpu.dynamic_rotate %1 by %c240_i32 dim 1 : vector<4x256xf32>, i32 -> vector<4x256xf32>
    %c7 = arith.constant 7 : index
    %c0_17 = arith.constant 0 : index
    %41 = vector.load %arg2[%c7, %c0_17] : memref<9x256xf32, #tpu.memory_space<vmem>>, vector<1x256xf32>
    %42 = vector.broadcast %41 : vector<1x256xf32> to vector<4x256xf32>
    %43 = arith.mulf %40, %42 : vector<4x256xf32>
    %44 = arith.truncf %43 : vector<4x256xf32> to vector<4x256xbf16>
    %c28 = arith.constant 28 : index
    %c0_18 = arith.constant 0 : index
    %45 = vector.load %arg15[%c28, %c0_18] : memref<288x256xbf16, #tpu.memory_space<vmem>>, vector<4x256xbf16>
    tpu.vector_store %arg15[%c28, %c0_18], %44 {strides = array<i32>} : memref<288x256xbf16, #tpu.memory_space<vmem>>, vector<4x256xbf16>,
    %c239_i32 = arith.constant 239 : i32
    %46 = tpu.dynamic_rotate %1 by %c239_i32 dim 1 : vector<4x256xf32>, i32 -> vector<4x256xf32>
    %c8_19 = arith.constant 8 : index
    %c0_20 = arith.constant 0 : index
    %47 = vector.load %arg2[%c8_19, %c0_20] : memref<9x256xf32, #tpu.memory_space<vmem>>, vector<1x256xf32>
    %48 = vector.broadcast %47 : vector<1x256xf32> to vector<4x256xf32>
    %49 = arith.mulf %46, %48 : vector<4x256xf32>
    %50 = arith.truncf %49 : vector<4x256xf32> to vector<4x256xbf16>
    %c32 = arith.constant 32 : index
    %c0_21 = arith.constant 0 : index
    %51 = vector.load %arg15[%c32, %c0_21] : memref<288x256xbf16, #tpu.memory_space<vmem>>, vector<4x256xbf16>
    tpu.vector_store %arg15[%c32, %c0_21], %50 {strides = array<i32>} : memref<288x256xbf16, #tpu.memory_space<vmem>>, vector<4x256xbf16>,
    %c0_22 = arith.constant 0 : index
    %c0_23 = arith.constant 0 : index
    %52 = vector.load %arg15[%c0_22, %c0_23] : memref<288x256xbf16, #tpu.memory_space<vmem>>, vector<36x256xbf16>
    %c0_24 = arith.constant 0 : index
    %c0_25 = arith.constant 0 : index
    %53 = vector.load %arg4[%c0_24, %c0_25] : memref<16x36xbf16, #tpu.memory_space<vmem>>, vector<16x36xbf16>
    %cst = arith.constant dense<0.000000e+00> : vector<16x256xf32>
    %54 = tpu.matmul %53, %52, %cst {dimension_numbers = #tpu.dot_dimension_numbers<[1], [0], [0], [1], [0, 0, 1, 1], [], []>} : vector<16x36xbf16>, vector<36x256xbf16>, vector<16x256xf32> -> vector<16x256xf32>
    %c0_26 = arith.constant 0 : index
    %c0_27 = arith.constant 0 : index
    %55 = vector.load %arg5[%c0_26, %c0_27] : memref<16x1xf32, #tpu.memory_space<vmem>>, vector<16x1xf32>
    %56 = vector.broadcast %55 : vector<16x1xf32> to vector<16x256xf32>
    %57 = arith.addf %54, %56 : vector<16x256xf32>
    %cst_28 = arith.constant 0.000000e+00 : f32
    %58 = vector.broadcast %cst_28 : f32 to vector<16x256xf32>
    %59 = arith.maximumf %57, %58 : vector<16x256xf32>
    %60 = arith.truncf %59 : vector<16x256xf32> to vector<16x256xbf16>
    %c0_29 = arith.constant 0 : index
    %c0_30 = arith.constant 0 : index
    %61 = vector.load %arg12[%c0_29, %c0_30] : memref<256x64xbf16, #tpu.memory_space<vmem>>, vector<256x64xbf16>
    %cst_31 = arith.constant dense<0.000000e+00> : vector<16x64xf32>
    %62 = tpu.matmul %60, %61, %cst_31 {dimension_numbers = #tpu.dot_dimension_numbers<[1], [0], [0], [1], [0, 0, 1, 1], [], []>} : vector<16x256xbf16>, vector<256x64xbf16>, vector<16x64xf32> -> vector<16x64xf32>
    %c9_i32 = arith.constant 9 : i32
    %63 = tpu.dynamic_rotate %62 by %c9_i32 dim 1 : vector<16x64xf32>, i32 -> vector<16x64xf32>
    %c0_32 = arith.constant 0 : index
    %c0_33 = arith.constant 0 : index
    %64 = vector.load %arg3[%c0_32, %c0_33] : memref<9x64xf32, #tpu.memory_space<vmem>>, vector<1x64xf32>
    %65 = vector.broadcast %64 : vector<1x64xf32> to vector<16x64xf32>
    %66 = arith.mulf %63, %65 : vector<16x64xf32>
    %67 = arith.truncf %66 : vector<16x64xf32> to vector<16x64xbf16>
    %c0_34 = arith.constant 0 : index
    %c0_35 = arith.constant 0 : index
    %68 = vector.load %arg15[%c0_34, %c0_35] : memref<288x256xbf16, #tpu.memory_space<vmem>>, vector<16x64xbf16>
    tpu.vector_store %arg15[%c0_34, %c0_35], %67 {strides = array<i32>} : memref<288x256xbf16, #tpu.memory_space<vmem>>, vector<16x64xbf16>,
    %c8_i32 = arith.constant 8 : i32
    %69 = tpu.dynamic_rotate %62 by %c8_i32 dim 1 : vector<16x64xf32>, i32 -> vector<16x64xf32>
    %c1_36 = arith.constant 1 : index
    %c0_37 = arith.constant 0 : index
    %70 = vector.load %arg3[%c1_36, %c0_37] : memref<9x64xf32, #tpu.memory_space<vmem>>, vector<1x64xf32>
    %71 = vector.broadcast %70 : vector<1x64xf32> to vector<16x64xf32>
    %72 = arith.mulf %69, %71 : vector<16x64xf32>
    %73 = arith.truncf %72 : vector<16x64xf32> to vector<16x64xbf16>
    %c16_38 = arith.constant 16 : index
    %c0_39 = arith.constant 0 : index
    %74 = vector.load %arg15[%c16_38, %c0_39] : memref<288x256xbf16, #tpu.memory_space<vmem>>, vector<16x64xbf16>
    tpu.vector_store %arg15[%c16_38, %c0_39], %73 {strides = array<i32>} : memref<288x256xbf16, #tpu.memory_space<vmem>>, vector<16x64xbf16>,
    %c7_i32 = arith.constant 7 : i32
    %75 = tpu.dynamic_rotate %62 by %c7_i32 dim 1 : vector<16x64xf32>, i32 -> vector<16x64xf32>
    %c2_40 = arith.constant 2 : index
    %c0_41 = arith.constant 0 : index
    %76 = vector.load %arg3[%c2_40, %c0_41] : memref<9x64xf32, #tpu.memory_space<vmem>>, vector<1x64xf32>
    %77 = vector.broadcast %76 : vector<1x64xf32> to vector<16x64xf32>
    %78 = arith.mulf %75, %77 : vector<16x64xf32>
    %79 = arith.truncf %78 : vector<16x64xf32> to vector<16x64xbf16>
    %c32_42 = arith.constant 32 : index
    %c0_43 = arith.constant 0 : index
    %80 = vector.load %arg15[%c32_42, %c0_43] : memref<288x256xbf16, #tpu.memory_space<vmem>>, vector<16x64xbf16>
    tpu.vector_store %arg15[%c32_42, %c0_43], %79 {strides = array<i32>} : memref<288x256xbf16, #tpu.memory_space<vmem>>, vector<16x64xbf16>,
    %c1_i32_44 = arith.constant 1 : i32
    %81 = tpu.dynamic_rotate %62 by %c1_i32_44 dim 1 : vector<16x64xf32>, i32 -> vector<16x64xf32>
    %c3_45 = arith.constant 3 : index
    %c0_46 = arith.constant 0 : index
    %82 = vector.load %arg3[%c3_45, %c0_46] : memref<9x64xf32, #tpu.memory_space<vmem>>, vector<1x64xf32>
    %83 = vector.broadcast %82 : vector<1x64xf32> to vector<16x64xf32>
    %84 = arith.mulf %81, %83 : vector<16x64xf32>
    %85 = arith.truncf %84 : vector<16x64xf32> to vector<16x64xbf16>
    %c48 = arith.constant 48 : index
    %c0_47 = arith.constant 0 : index
    %86 = vector.load %arg15[%c48, %c0_47] : memref<288x256xbf16, #tpu.memory_space<vmem>>, vector<16x64xbf16>
    tpu.vector_store %arg15[%c48, %c0_47], %85 {strides = array<i32>} : memref<288x256xbf16, #tpu.memory_space<vmem>>, vector<16x64xbf16>,
    %87 = arith.truncf %62 : vector<16x64xf32> to vector<16x64xbf16>
    %c64 = arith.constant 64 : index
    %c0_48 = arith.constant 0 : index
    %88 = vector.load %arg15[%c64, %c0_48] : memref<288x256xbf16, #tpu.memory_space<vmem>>, vector<16x64xbf16>
    tpu.vector_store %arg15[%c64, %c0_48], %87 {strides = array<i32>} : memref<288x256xbf16, #tpu.memory_space<vmem>>, vector<16x64xbf16>,
    %c63_i32 = arith.constant 63 : i32
    %89 = tpu.dynamic_rotate %62 by %c63_i32 dim 1 : vector<16x64xf32>, i32 -> vector<16x64xf32>
    %c5_49 = arith.constant 5 : index
    %c0_50 = arith.constant 0 : index
    %90 = vector.load %arg3[%c5_49, %c0_50] : memref<9x64xf32, #tpu.memory_space<vmem>>, vector<1x64xf32>
    %91 = vector.broadcast %90 : vector<1x64xf32> to vector<16x64xf32>
    %92 = arith.mulf %89, %91 : vector<16x64xf32>
    %93 = arith.truncf %92 : vector<16x64xf32> to vector<16x64xbf16>
    %c80 = arith.constant 80 : index
    %c0_51 = arith.constant 0 : index
    %94 = vector.load %arg15[%c80, %c0_51] : memref<288x256xbf16, #tpu.memory_space<vmem>>, vector<16x64xbf16>
    tpu.vector_store %arg15[%c80, %c0_51], %93 {strides = array<i32>} : memref<288x256xbf16, #tpu.memory_space<vmem>>, vector<16x64xbf16>,
    %c57_i32 = arith.constant 57 : i32
    %95 = tpu.dynamic_rotate %62 by %c57_i32 dim 1 : vector<16x64xf32>, i32 -> vector<16x64xf32>
    %c6_52 = arith.constant 6 : index
    %c0_53 = arith.constant 0 : index
    %96 = vector.load %arg3[%c6_52, %c0_53] : memref<9x64xf32, #tpu.memory_space<vmem>>, vector<1x64xf32>
    %97 = vector.broadcast %96 : vector<1x64xf32> to vector<16x64xf32>
    %98 = arith.mulf %95, %97 : vector<16x64xf32>
    %99 = arith.truncf %98 : vector<16x64xf32> to vector<16x64xbf16>
    %c96 = arith.constant 96 : index
    %c0_54 = arith.constant 0 : index
    %100 = vector.load %arg15[%c96, %c0_54] : memref<288x256xbf16, #tpu.memory_space<vmem>>, vector<16x64xbf16>
    tpu.vector_store %arg15[%c96, %c0_54], %99 {strides = array<i32>} : memref<288x256xbf16, #tpu.memory_space<vmem>>, vector<16x64xbf16>,
    %c56_i32 = arith.constant 56 : i32
    %101 = tpu.dynamic_rotate %62 by %c56_i32 dim 1 : vector<16x64xf32>, i32 -> vector<16x64xf32>
    %c7_55 = arith.constant 7 : index
    %c0_56 = arith.constant 0 : index
    %102 = vector.load %arg3[%c7_55, %c0_56] : memref<9x64xf32, #tpu.memory_space<vmem>>, vector<1x64xf32>
    %103 = vector.broadcast %102 : vector<1x64xf32> to vector<16x64xf32>
    %104 = arith.mulf %101, %103 : vector<16x64xf32>
    %105 = arith.truncf %104 : vector<16x64xf32> to vector<16x64xbf16>
    %c112 = arith.constant 112 : index
    %c0_57 = arith.constant 0 : index
    %106 = vector.load %arg15[%c112, %c0_57] : memref<288x256xbf16, #tpu.memory_space<vmem>>, vector<16x64xbf16>
    tpu.vector_store %arg15[%c112, %c0_57], %105 {strides = array<i32>} : memref<288x256xbf16, #tpu.memory_space<vmem>>, vector<16x64xbf16>,
    %c55_i32 = arith.constant 55 : i32
    %107 = tpu.dynamic_rotate %62 by %c55_i32 dim 1 : vector<16x64xf32>, i32 -> vector<16x64xf32>
    %c8_58 = arith.constant 8 : index
    %c0_59 = arith.constant 0 : index
    %108 = vector.load %arg3[%c8_58, %c0_59] : memref<9x64xf32, #tpu.memory_space<vmem>>, vector<1x64xf32>
    %109 = vector.broadcast %108 : vector<1x64xf32> to vector<16x64xf32>
    %110 = arith.mulf %107, %109 : vector<16x64xf32>
    %111 = arith.truncf %110 : vector<16x64xf32> to vector<16x64xbf16>
    %c128 = arith.constant 128 : index
    %c0_60 = arith.constant 0 : index
    %112 = vector.load %arg15[%c128, %c0_60] : memref<288x256xbf16, #tpu.memory_space<vmem>>, vector<16x64xbf16>
    tpu.vector_store %arg15[%c128, %c0_60], %111 {strides = array<i32>} : memref<288x256xbf16, #tpu.memory_space<vmem>>, vector<16x64xbf16>,
    %c0_61 = arith.constant 0 : index
    %c0_62 = arith.constant 0 : index
    %113 = vector.load %arg15[%c0_61, %c0_62] : memref<288x256xbf16, #tpu.memory_space<vmem>>, vector<144x64xbf16>
    %c0_63 = arith.constant 0 : index
    %c0_64 = arith.constant 0 : index
    %114 = vector.load %arg6[%c0_63, %c0_64] : memref<32x144xbf16, #tpu.memory_space<vmem>>, vector<32x144xbf16>
    %cst_65 = arith.constant dense<0.000000e+00> : vector<32x64xf32>
    %115 = tpu.matmul %114, %113, %cst_65 {dimension_numbers = #tpu.dot_dimension_numbers<[1], [0], [0], [1], [0, 0, 1, 1], [], []>} : vector<32x144xbf16>, vector<144x64xbf16>, vector<32x64xf32> -> vector<32x64xf32>
    %c0_66 = arith.constant 0 : index
    %c0_67 = arith.constant 0 : index
    %116 = vector.load %arg7[%c0_66, %c0_67] : memref<32x1xf32, #tpu.memory_space<vmem>>, vector<32x1xf32>
    %117 = vector.broadcast %116 : vector<32x1xf32> to vector<32x64xf32>
    %118 = arith.addf %115, %117 : vector<32x64xf32>
    %cst_68 = arith.constant 0.000000e+00 : f32
    %119 = vector.broadcast %cst_68 : f32 to vector<32x64xf32>
    %120 = arith.maximumf %118, %119 : vector<32x64xf32>
    %121 = arith.truncf %120 : vector<32x64xf32> to vector<32x64xbf16>
    %c0_69 = arith.constant 0 : index
    %c0_70 = arith.constant 0 : index
    %122 = vector.load %arg13[%c0_69, %c0_70] : memref<64x256xbf16, #tpu.memory_space<vmem>>, vector<64x256xbf16>
    %cst_71 = arith.constant dense<0.000000e+00> : vector<32x256xf32>
    %123 = tpu.matmul %121, %122, %cst_71 {dimension_numbers = #tpu.dot_dimension_numbers<[1], [0], [0], [1], [0, 0, 1, 1], [], []>} : vector<32x64xbf16>, vector<64x256xbf16>, vector<32x256xf32> -> vector<32x256xf32>
    %c17_i32_72 = arith.constant 17 : i32
    %124 = tpu.dynamic_rotate %123 by %c17_i32_72 dim 1 : vector<32x256xf32>, i32 -> vector<32x256xf32>
    %c0_73 = arith.constant 0 : index
    %c0_74 = arith.constant 0 : index
    %125 = vector.load %arg2[%c0_73, %c0_74] : memref<9x256xf32, #tpu.memory_space<vmem>>, vector<1x256xf32>
    %126 = vector.broadcast %125 : vector<1x256xf32> to vector<32x256xf32>
    %127 = arith.mulf %124, %126 : vector<32x256xf32>
    %128 = arith.truncf %127 : vector<32x256xf32> to vector<32x256xbf16>
    %c0_75 = arith.constant 0 : index
    %c0_76 = arith.constant 0 : index
    %129 = vector.load %arg15[%c0_75, %c0_76] : memref<288x256xbf16, #tpu.memory_space<vmem>>, vector<32x256xbf16>
    tpu.vector_store %arg15[%c0_75, %c0_76], %128 {strides = array<i32>} : memref<288x256xbf16, #tpu.memory_space<vmem>>, vector<32x256xbf16>,
    %c16_i32_77 = arith.constant 16 : i32
    %130 = tpu.dynamic_rotate %123 by %c16_i32_77 dim 1 : vector<32x256xf32>, i32 -> vector<32x256xf32>
    %c1_78 = arith.constant 1 : index
    %c0_79 = arith.constant 0 : index
    %131 = vector.load %arg2[%c1_78, %c0_79] : memref<9x256xf32, #tpu.memory_space<vmem>>, vector<1x256xf32>
    %132 = vector.broadcast %131 : vector<1x256xf32> to vector<32x256xf32>
    %133 = arith.mulf %130, %132 : vector<32x256xf32>
    %134 = arith.truncf %133 : vector<32x256xf32> to vector<32x256xbf16>
    %c32_80 = arith.constant 32 : index
    %c0_81 = arith.constant 0 : index
    %135 = vector.load %arg15[%c32_80, %c0_81] : memref<288x256xbf16, #tpu.memory_space<vmem>>, vector<32x256xbf16>
    tpu.vector_store %arg15[%c32_80, %c0_81], %134 {strides = array<i32>} : memref<288x256xbf16, #tpu.memory_space<vmem>>, vector<32x256xbf16>,
    %c15_i32_82 = arith.constant 15 : i32
    %136 = tpu.dynamic_rotate %123 by %c15_i32_82 dim 1 : vector<32x256xf32>, i32 -> vector<32x256xf32>
    %c2_83 = arith.constant 2 : index
    %c0_84 = arith.constant 0 : index
    %137 = vector.load %arg2[%c2_83, %c0_84] : memref<9x256xf32, #tpu.memory_space<vmem>>, vector<1x256xf32>
    %138 = vector.broadcast %137 : vector<1x256xf32> to vector<32x256xf32>
    %139 = arith.mulf %136, %138 : vector<32x256xf32>
    %140 = arith.truncf %139 : vector<32x256xf32> to vector<32x256xbf16>
    %c64_85 = arith.constant 64 : index
    %c0_86 = arith.constant 0 : index
    %141 = vector.load %arg15[%c64_85, %c0_86] : memref<288x256xbf16, #tpu.memory_space<vmem>>, vector<32x256xbf16>
    tpu.vector_store %arg15[%c64_85, %c0_86], %140 {strides = array<i32>} : memref<288x256xbf16, #tpu.memory_space<vmem>>, vector<32x256xbf16>,
    %c1_i32_87 = arith.constant 1 : i32
    %142 = tpu.dynamic_rotate %123 by %c1_i32_87 dim 1 : vector<32x256xf32>, i32 -> vector<32x256xf32>
    %c3_88 = arith.constant 3 : index
    %c0_89 = arith.constant 0 : index
    %143 = vector.load %arg2[%c3_88, %c0_89] : memref<9x256xf32, #tpu.memory_space<vmem>>, vector<1x256xf32>
    %144 = vector.broadcast %143 : vector<1x256xf32> to vector<32x256xf32>
    %145 = arith.mulf %142, %144 : vector<32x256xf32>
    %146 = arith.truncf %145 : vector<32x256xf32> to vector<32x256xbf16>
    %c96_90 = arith.constant 96 : index
    %c0_91 = arith.constant 0 : index
    %147 = vector.load %arg15[%c96_90, %c0_91] : memref<288x256xbf16, #tpu.memory_space<vmem>>, vector<32x256xbf16>
    tpu.vector_store %arg15[%c96_90, %c0_91], %146 {strides = array<i32>} : memref<288x256xbf16, #tpu.memory_space<vmem>>, vector<32x256xbf16>,
    %148 = arith.truncf %123 : vector<32x256xf32> to vector<32x256xbf16>
    %c128_92 = arith.constant 128 : index
    %c0_93 = arith.constant 0 : index
    %149 = vector.load %arg15[%c128_92, %c0_93] : memref<288x256xbf16, #tpu.memory_space<vmem>>, vector<32x256xbf16>
    tpu.vector_store %arg15[%c128_92, %c0_93], %148 {strides = array<i32>} : memref<288x256xbf16, #tpu.memory_space<vmem>>, vector<32x256xbf16>,
    %c255_i32_94 = arith.constant 255 : i32
    %150 = tpu.dynamic_rotate %123 by %c255_i32_94 dim 1 : vector<32x256xf32>, i32 -> vector<32x256xf32>
    %c5_95 = arith.constant 5 : index
    %c0_96 = arith.constant 0 : index
    %151 = vector.load %arg2[%c5_95, %c0_96] : memref<9x256xf32, #tpu.memory_space<vmem>>, vector<1x256xf32>
    %152 = vector.broadcast %151 : vector<1x256xf32> to vector<32x256xf32>
    %153 = arith.mulf %150, %152 : vector<32x256xf32>
    %154 = arith.truncf %153 : vector<32x256xf32> to vector<32x256xbf16>
    %c160 = arith.constant 160 : index
    %c0_97 = arith.constant 0 : index
    %155 = vector.load %arg15[%c160, %c0_97] : memref<288x256xbf16, #tpu.memory_space<vmem>>, vector<32x256xbf16>
    tpu.vector_store %arg15[%c160, %c0_97], %154 {strides = array<i32>} : memref<288x256xbf16, #tpu.memory_space<vmem>>, vector<32x256xbf16>,
    %c241_i32_98 = arith.constant 241 : i32
    %156 = tpu.dynamic_rotate %123 by %c241_i32_98 dim 1 : vector<32x256xf32>, i32 -> vector<32x256xf32>
    %c6_99 = arith.constant 6 : index
    %c0_100 = arith.constant 0 : index
    %157 = vector.load %arg2[%c6_99, %c0_100] : memref<9x256xf32, #tpu.memory_space<vmem>>, vector<1x256xf32>
    %158 = vector.broadcast %157 : vector<1x256xf32> to vector<32x256xf32>
    %159 = arith.mulf %156, %158 : vector<32x256xf32>
    %160 = arith.truncf %159 : vector<32x256xf32> to vector<32x256xbf16>
    %c192 = arith.constant 192 : index
    %c0_101 = arith.constant 0 : index
    %161 = vector.load %arg15[%c192, %c0_101] : memref<288x256xbf16, #tpu.memory_space<vmem>>, vector<32x256xbf16>
    tpu.vector_store %arg15[%c192, %c0_101], %160 {strides = array<i32>} : memref<288x256xbf16, #tpu.memory_space<vmem>>, vector<32x256xbf16>,
    %c240_i32_102 = arith.constant 240 : i32
    %162 = tpu.dynamic_rotate %123 by %c240_i32_102 dim 1 : vector<32x256xf32>, i32 -> vector<32x256xf32>
    %c7_103 = arith.constant 7 : index
    %c0_104 = arith.constant 0 : index
    %163 = vector.load %arg2[%c7_103, %c0_104] : memref<9x256xf32, #tpu.memory_space<vmem>>, vector<1x256xf32>
    %164 = vector.broadcast %163 : vector<1x256xf32> to vector<32x256xf32>
    %165 = arith.mulf %162, %164 : vector<32x256xf32>
    %166 = arith.truncf %165 : vector<32x256xf32> to vector<32x256xbf16>
    %c224 = arith.constant 224 : index
    %c0_105 = arith.constant 0 : index
    %167 = vector.load %arg15[%c224, %c0_105] : memref<288x256xbf16, #tpu.memory_space<vmem>>, vector<32x256xbf16>
    tpu.vector_store %arg15[%c224, %c0_105], %166 {strides = array<i32>} : memref<288x256xbf16, #tpu.memory_space<vmem>>, vector<32x256xbf16>,
    %c239_i32_106 = arith.constant 239 : i32
    %168 = tpu.dynamic_rotate %123 by %c239_i32_106 dim 1 : vector<32x256xf32>, i32 -> vector<32x256xf32>
    %c8_107 = arith.constant 8 : index
    %c0_108 = arith.constant 0 : index
    %169 = vector.load %arg2[%c8_107, %c0_108] : memref<9x256xf32, #tpu.memory_space<vmem>>, vector<1x256xf32>
    %170 = vector.broadcast %169 : vector<1x256xf32> to vector<32x256xf32>
    %171 = arith.mulf %168, %170 : vector<32x256xf32>
    %172 = arith.truncf %171 : vector<32x256xf32> to vector<32x256xbf16>
    %c256 = arith.constant 256 : index
    %c0_109 = arith.constant 0 : index
    %173 = vector.load %arg15[%c256, %c0_109] : memref<288x256xbf16, #tpu.memory_space<vmem>>, vector<32x256xbf16>
    tpu.vector_store %arg15[%c256, %c0_109], %172 {strides = array<i32>} : memref<288x256xbf16, #tpu.memory_space<vmem>>, vector<32x256xbf16>,
    %c0_110 = arith.constant 0 : index
    %c0_111 = arith.constant 0 : index
    %174 = vector.load %arg15[%c0_110, %c0_111] : memref<288x256xbf16, #tpu.memory_space<vmem>>, vector<288x256xbf16>
    %c0_112 = arith.constant 0 : index
    %c0_113 = arith.constant 0 : index
    %175 = vector.load %arg8[%c0_112, %c0_113] : memref<16x288xbf16, #tpu.memory_space<vmem>>, vector<16x288xbf16>
    %cst_114 = arith.constant dense<0.000000e+00> : vector<16x256xf32>
    %176 = tpu.matmul %175, %174, %cst_114 {dimension_numbers = #tpu.dot_dimension_numbers<[1], [0], [0], [1], [0, 0, 1, 1], [], []>} : vector<16x288xbf16>, vector<288x256xbf16>, vector<16x256xf32> -> vector<16x256xf32>
    %c0_115 = arith.constant 0 : index
    %c0_116 = arith.constant 0 : index
    %177 = vector.load %arg9[%c0_115, %c0_116] : memref<16x1xf32, #tpu.memory_space<vmem>>, vector<16x1xf32>
    %178 = vector.broadcast %177 : vector<16x1xf32> to vector<16x256xf32>
    %179 = arith.addf %176, %178 : vector<16x256xf32>
    %cst_117 = arith.constant 0.000000e+00 : f32
    %180 = vector.broadcast %cst_117 : f32 to vector<16x256xf32>
    %181 = arith.maximumf %179, %180 : vector<16x256xf32>
    %c17_i32_118 = arith.constant 17 : i32
    %182 = tpu.dynamic_rotate %181 by %c17_i32_118 dim 1 : vector<16x256xf32>, i32 -> vector<16x256xf32>
    %c0_119 = arith.constant 0 : index
    %c0_120 = arith.constant 0 : index
    %183 = vector.load %arg2[%c0_119, %c0_120] : memref<9x256xf32, #tpu.memory_space<vmem>>, vector<1x256xf32>
    %184 = vector.broadcast %183 : vector<1x256xf32> to vector<16x256xf32>
    %185 = arith.mulf %182, %184 : vector<16x256xf32>
    %186 = arith.truncf %185 : vector<16x256xf32> to vector<16x256xbf16>
    %c0_121 = arith.constant 0 : index
    %c0_122 = arith.constant 0 : index
    %187 = vector.load %arg15[%c0_121, %c0_122] : memref<288x256xbf16, #tpu.memory_space<vmem>>, vector<16x256xbf16>
    tpu.vector_store %arg15[%c0_121, %c0_122], %186 {strides = array<i32>} : memref<288x256xbf16, #tpu.memory_space<vmem>>, vector<16x256xbf16>,
    %c16_i32_123 = arith.constant 16 : i32
    %188 = tpu.dynamic_rotate %181 by %c16_i32_123 dim 1 : vector<16x256xf32>, i32 -> vector<16x256xf32>
    %c1_124 = arith.constant 1 : index
    %c0_125 = arith.constant 0 : index
    %189 = vector.load %arg2[%c1_124, %c0_125] : memref<9x256xf32, #tpu.memory_space<vmem>>, vector<1x256xf32>
    %190 = vector.broadcast %189 : vector<1x256xf32> to vector<16x256xf32>
    %191 = arith.mulf %188, %190 : vector<16x256xf32>
    %192 = arith.truncf %191 : vector<16x256xf32> to vector<16x256xbf16>
    %c16_126 = arith.constant 16 : index
    %c0_127 = arith.constant 0 : index
    %193 = vector.load %arg15[%c16_126, %c0_127] : memref<288x256xbf16, #tpu.memory_space<vmem>>, vector<16x256xbf16>
    tpu.vector_store %arg15[%c16_126, %c0_127], %192 {strides = array<i32>} : memref<288x256xbf16, #tpu.memory_space<vmem>>, vector<16x256xbf16>,
    %c15_i32_128 = arith.constant 15 : i32
    %194 = tpu.dynamic_rotate %181 by %c15_i32_128 dim 1 : vector<16x256xf32>, i32 -> vector<16x256xf32>
    %c2_129 = arith.constant 2 : index
    %c0_130 = arith.constant 0 : index
    %195 = vector.load %arg2[%c2_129, %c0_130] : memref<9x256xf32, #tpu.memory_space<vmem>>, vector<1x256xf32>
    %196 = vector.broadcast %195 : vector<1x256xf32> to vector<16x256xf32>
    %197 = arith.mulf %194, %196 : vector<16x256xf32>
    %198 = arith.truncf %197 : vector<16x256xf32> to vector<16x256xbf16>
    %c32_131 = arith.constant 32 : index
    %c0_132 = arith.constant 0 : index
    %199 = vector.load %arg15[%c32_131, %c0_132] : memref<288x256xbf16, #tpu.memory_space<vmem>>, vector<16x256xbf16>
    tpu.vector_store %arg15[%c32_131, %c0_132], %198 {strides = array<i32>} : memref<288x256xbf16, #tpu.memory_space<vmem>>, vector<16x256xbf16>,
    %c1_i32_133 = arith.constant 1 : i32
    %200 = tpu.dynamic_rotate %181 by %c1_i32_133 dim 1 : vector<16x256xf32>, i32 -> vector<16x256xf32>
    %c3_134 = arith.constant 3 : index
    %c0_135 = arith.constant 0 : index
    %201 = vector.load %arg2[%c3_134, %c0_135] : memref<9x256xf32, #tpu.memory_space<vmem>>, vector<1x256xf32>
    %202 = vector.broadcast %201 : vector<1x256xf32> to vector<16x256xf32>
    %203 = arith.mulf %200, %202 : vector<16x256xf32>
    %204 = arith.truncf %203 : vector<16x256xf32> to vector<16x256xbf16>
    %c48_136 = arith.constant 48 : index
    %c0_137 = arith.constant 0 : index
    %205 = vector.load %arg15[%c48_136, %c0_137] : memref<288x256xbf16, #tpu.memory_space<vmem>>, vector<16x256xbf16>
    tpu.vector_store %arg15[%c48_136, %c0_137], %204 {strides = array<i32>} : memref<288x256xbf16, #tpu.memory_space<vmem>>, vector<16x256xbf16>,
    %206 = arith.truncf %181 : vector<16x256xf32> to vector<16x256xbf16>
    %c64_138 = arith.constant 64 : index
    %c0_139 = arith.constant 0 : index
    %207 = vector.load %arg15[%c64_138, %c0_139] : memref<288x256xbf16, #tpu.memory_space<vmem>>, vector<16x256xbf16>
    tpu.vector_store %arg15[%c64_138, %c0_139], %206 {strides = array<i32>} : memref<288x256xbf16, #tpu.memory_space<vmem>>, vector<16x256xbf16>,
    %c255_i32_140 = arith.constant 255 : i32
    %208 = tpu.dynamic_rotate %181 by %c255_i32_140 dim 1 : vector<16x256xf32>, i32 -> vector<16x256xf32>
    %c5_141 = arith.constant 5 : index
    %c0_142 = arith.constant 0 : index
    %209 = vector.load %arg2[%c5_141, %c0_142] : memref<9x256xf32, #tpu.memory_space<vmem>>, vector<1x256xf32>
    %210 = vector.broadcast %209 : vector<1x256xf32> to vector<16x256xf32>
    %211 = arith.mulf %208, %210 : vector<16x256xf32>
    %212 = arith.truncf %211 : vector<16x256xf32> to vector<16x256xbf16>
    %c80_143 = arith.constant 80 : index
    %c0_144 = arith.constant 0 : index
    %213 = vector.load %arg15[%c80_143, %c0_144] : memref<288x256xbf16, #tpu.memory_space<vmem>>, vector<16x256xbf16>
    tpu.vector_store %arg15[%c80_143, %c0_144], %212 {strides = array<i32>} : memref<288x256xbf16, #tpu.memory_space<vmem>>, vector<16x256xbf16>,
    %c241_i32_145 = arith.constant 241 : i32
    %214 = tpu.dynamic_rotate %181 by %c241_i32_145 dim 1 : vector<16x256xf32>, i32 -> vector<16x256xf32>
    %c6_146 = arith.constant 6 : index
    %c0_147 = arith.constant 0 : index
    %215 = vector.load %arg2[%c6_146, %c0_147] : memref<9x256xf32, #tpu.memory_space<vmem>>, vector<1x256xf32>
    %216 = vector.broadcast %215 : vector<1x256xf32> to vector<16x256xf32>
    %217 = arith.mulf %214, %216 : vector<16x256xf32>
    %218 = arith.truncf %217 : vector<16x256xf32> to vector<16x256xbf16>
    %c96_148 = arith.constant 96 : index
    %c0_149 = arith.constant 0 : index
    %219 = vector.load %arg15[%c96_148, %c0_149] : memref<288x256xbf16, #tpu.memory_space<vmem>>, vector<16x256xbf16>
    tpu.vector_store %arg15[%c96_148, %c0_149], %218 {strides = array<i32>} : memref<288x256xbf16, #tpu.memory_space<vmem>>, vector<16x256xbf16>,
    %c240_i32_150 = arith.constant 240 : i32
    %220 = tpu.dynamic_rotate %181 by %c240_i32_150 dim 1 : vector<16x256xf32>, i32 -> vector<16x256xf32>
    %c7_151 = arith.constant 7 : index
    %c0_152 = arith.constant 0 : index
    %221 = vector.load %arg2[%c7_151, %c0_152] : memref<9x256xf32, #tpu.memory_space<vmem>>, vector<1x256xf32>
    %222 = vector.broadcast %221 : vector<1x256xf32> to vector<16x256xf32>
    %223 = arith.mulf %220, %222 : vector<16x256xf32>
    %224 = arith.truncf %223 : vector<16x256xf32> to vector<16x256xbf16>
    %c112_153 = arith.constant 112 : index
    %c0_154 = arith.constant 0 : index
    %225 = vector.load %arg15[%c112_153, %c0_154] : memref<288x256xbf16, #tpu.memory_space<vmem>>, vector<16x256xbf16>
    tpu.vector_store %arg15[%c112_153, %c0_154], %224 {strides = array<i32>} : memref<288x256xbf16, #tpu.memory_space<vmem>>, vector<16x256xbf16>,
    %c239_i32_155 = arith.constant 239 : i32
    %226 = tpu.dynamic_rotate %181 by %c239_i32_155 dim 1 : vector<16x256xf32>, i32 -> vector<16x256xf32>
    %c8_156 = arith.constant 8 : index
    %c0_157 = arith.constant 0 : index
    %227 = vector.load %arg2[%c8_156, %c0_157] : memref<9x256xf32, #tpu.memory_space<vmem>>, vector<1x256xf32>
    %228 = vector.broadcast %227 : vector<1x256xf32> to vector<16x256xf32>
    %229 = arith.mulf %226, %228 : vector<16x256xf32>
    %230 = arith.truncf %229 : vector<16x256xf32> to vector<16x256xbf16>
    %c128_158 = arith.constant 128 : index
    %c0_159 = arith.constant 0 : index
    %231 = vector.load %arg15[%c128_158, %c0_159] : memref<288x256xbf16, #tpu.memory_space<vmem>>, vector<16x256xbf16>
    tpu.vector_store %arg15[%c128_158, %c0_159], %230 {strides = array<i32>} : memref<288x256xbf16, #tpu.memory_space<vmem>>, vector<16x256xbf16>,
    %c0_160 = arith.constant 0 : index
    %c0_161 = arith.constant 0 : index
    %232 = vector.load %arg15[%c0_160, %c0_161] : memref<288x256xbf16, #tpu.memory_space<vmem>>, vector<144x256xbf16>
    %c0_162 = arith.constant 0 : index
    %c0_163 = arith.constant 0 : index
    %233 = vector.load %arg10[%c0_162, %c0_163] : memref<4x144xbf16, #tpu.memory_space<vmem>>, vector<4x144xbf16>
    %cst_164 = arith.constant dense<0.000000e+00> : vector<4x256xf32>
    %234 = tpu.matmul %233, %232, %cst_164 {dimension_numbers = #tpu.dot_dimension_numbers<[1], [0], [0], [1], [0, 0, 1, 1], [], []>} : vector<4x144xbf16>, vector<144x256xbf16>, vector<4x256xf32> -> vector<4x256xf32>
    %c0_165 = arith.constant 0 : index
    %c0_166 = arith.constant 0 : index
    %235 = vector.load %arg11[%c0_165, %c0_166] : memref<4x1xf32, #tpu.memory_space<vmem>>, vector<4x1xf32>
    %236 = vector.broadcast %235 : vector<4x1xf32> to vector<4x256xf32>
    %237 = arith.addf %234, %236 : vector<4x256xf32>
    %238 = math.tanh %237 : vector<4x256xf32>
    %c0_167 = arith.constant 0 : index
    %c0_168 = arith.constant 0 : index
    %c0_169 = arith.constant 0 : index
    %239 = vector.load %arg14[%c0_167, %c0_168, %c0_169] : memref<1x4x256xf32, #tpu.memory_space<vmem>>, vector<1x4x256xf32>
    %240 = vector.shape_cast %239 : vector<1x4x256xf32> to vector<4x256xf32>
    %241 = vector.shape_cast %238 : vector<4x256xf32> to vector<1x4x256xf32>
    tpu.vector_store %arg14[%c0_167, %c0_168, %c0_169], %241 {strides = array<i32>} : memref<1x4x256xf32, #tpu.memory_space<vmem>>, vector<1x4x256xf32>,
    return
  }
  func.func @transform_0(%arg0: i32) -> (i32, i32, i32) {
    %c0_i32 = arith.constant 0 : i32
    %c0_i32_0 = arith.constant 0 : i32
    %c0_i32_1 = arith.constant 0 : i32
    return %arg0, %c0_i32, %c0_i32_0 : i32, i32, i32
  }
  func.func @transform_1(%arg0: i32) -> (i32, i32) {
    %c0_i32 = arith.constant 0 : i32
    %c0_i32_0 = arith.constant 0 : i32
    %c0_i32_1 = arith.constant 0 : i32
    return %c0_i32, %c0_i32_0 : i32, i32
  }
  func.func @transform_2(%arg0: i32) -> (i32, i32) {
    %c0_i32 = arith.constant 0 : i32
    %c0_i32_0 = arith.constant 0 : i32
    %c0_i32_1 = arith.constant 0 : i32
    return %c0_i32, %c0_i32_0 : i32, i32
  }
  func.func @transform_3(%arg0: i32) -> (i32, i32) {
    %c0_i32 = arith.constant 0 : i32
    %c0_i32_0 = arith.constant 0 : i32
    %c0_i32_1 = arith.constant 0 : i32
    return %c0_i32, %c0_i32_0 : i32, i32
  }
  func.func @transform_4(%arg0: i32) -> (i32, i32) {
    %c0_i32 = arith.constant 0 : i32
    %c0_i32_0 = arith.constant 0 : i32
    %c0_i32_1 = arith.constant 0 : i32
    return %c0_i32, %c0_i32_0 : i32, i32
  }
  func.func @transform_5(%arg0: i32) -> (i32, i32) {
    %c0_i32 = arith.constant 0 : i32
    %c0_i32_0 = arith.constant 0 : i32
    %c0_i32_1 = arith.constant 0 : i32
    return %c0_i32, %c0_i32_0 : i32, i32
  }
  func.func @transform_6(%arg0: i32) -> (i32, i32) {
    %c0_i32 = arith.constant 0 : i32
    %c0_i32_0 = arith.constant 0 : i32
    %c0_i32_1 = arith.constant 0 : i32
    return %c0_i32, %c0_i32_0 : i32, i32
  }
  func.func @transform_7(%arg0: i32) -> (i32, i32) {
    %c0_i32 = arith.constant 0 : i32
    %c0_i32_0 = arith.constant 0 : i32
    %c0_i32_1 = arith.constant 0 : i32
    return %c0_i32, %c0_i32_0 : i32, i32
  }
  func.func @transform_8(%arg0: i32) -> (i32, i32) {
    %c0_i32 = arith.constant 0 : i32
    %c0_i32_0 = arith.constant 0 : i32
    %c0_i32_1 = arith.constant 0 : i32
    return %c0_i32, %c0_i32_0 : i32, i32
  }
  func.func @transform_9(%arg0: i32) -> (i32, i32) {
    %c0_i32 = arith.constant 0 : i32
    %c0_i32_0 = arith.constant 0 : i32
    %c0_i32_1 = arith.constant 0 : i32
    return %c0_i32, %c0_i32_0 : i32, i32
  }
  func.func @transform_10(%arg0: i32) -> (i32, i32) {
    %c0_i32 = arith.constant 0 : i32
    %c0_i32_0 = arith.constant 0 : i32
    %c0_i32_1 = arith.constant 0 : i32
    return %c0_i32, %c0_i32_0 : i32, i32
  }
  func.func @transform_11(%arg0: i32) -> (i32, i32) {
    %c0_i32 = arith.constant 0 : i32
    %c0_i32_0 = arith.constant 0 : i32
    %c0_i32_1 = arith.constant 0 : i32
    return %c0_i32, %c0_i32_0 : i32, i32
  }
  func.func @transform_12(%arg0: i32) -> (i32, i32) {
    %c0_i32 = arith.constant 0 : i32
    %c0_i32_0 = arith.constant 0 : i32
    %c0_i32_1 = arith.constant 0 : i32
    return %c0_i32, %c0_i32_0 : i32, i32
  }
  func.func @transform_13(%arg0: i32) -> (i32, i32, i32) {
    %c0_i32 = arith.constant 0 : i32
    %c0_i32_0 = arith.constant 0 : i32
    %c0_i32_1 = arith.constant 0 : i32
    return %arg0, %c0_i32, %c0_i32_0 : i32, i32, i32
  }
}

</mosaic_0001>

<bundles_post_ra>
// kernel: generator_forward.1
= control target key start
LH: loop header
LB: loop body
LE: loop exit
PB: predicated region body
PF: predicated region fallthrough
CT: control target
= control target key end

     0   :  { %s3611_s25 = smov 0   ;;  %s4673_s0 = inlined_call_operand.vmem [shape: f32[2,4,256], index: 0, kind: input, shape index: {}]   ;;  %s4674_s1 = inlined_call_operand.vmem [shape: f32[9,256], index: 1, kind: input, shape index: {}]   ;;  %s4675_s2 = inlined_call_operand.vmem [shape: f32[9,64], index: 2, kind: input, shape index: {}]   ;;  %s4676_s3 = inlined_call_operand.vmem [shape: bf16[16,36], index: 3, kind: input, shape index: {}]   ;;  %s4677_s4 = inlined_call_operand.vmem [shape: f32[16,1], index: 4, kind: input, shape index: {}]   ;;  %s4678_s5 = inlined_call_operand.vmem [shape: bf16[32,144], index: 5, kind: input, shape index: {}]   ;;  %s4679_s6 = inlined_call_operand.vmem [shape: f32[32,1], index: 6, kind: input, shape index: {}]   ;;  %s4680_s7 = inlined_call_operand.vmem [shape: bf16[16,288], index: 7, kind: input, shape index: {}]   ;;  %s4681_s8 = inlined_call_operand.vmem [shape: f32[16,1], index: 8, kind: input, shape index: {}]   ;;  %s4682_s9 = inlined_call_operand.vmem [shape: bf16[4,144], index: 9, kind: input, shape index: {}]   ;;  %s4683_s10 = inlined_call_operand.vmem [shape: f32[4,1], index: 10, kind: input, shape index: {}]   ;;  %s4684_s11 = inlined_call_operand.vmem [shape: bf16[256,64], index: 11, kind: input, shape index: {}]   ;;  %s4685_s12 = inlined_call_operand.vmem [shape: bf16[64,256], index: 12, kind: input, shape index: {}]   ;;  %s4686_s13 = inlined_call_operand.vmem [shape: f32[2,4,256], index: 13, kind: output, shape index: {}]  }
   0x1 LB: > { %s3024_s26 = sadd.s32 4294967295, %s3515_s25   ;;  %p3028_p0 = scmp.ge.s32.totalorder %s3515_s25, 1  ;;  %s3515_s25 = sphi %s3611_s25, %s23_s25  }
   0x2   : > { %p387_p1 = scmp.lt.s32.totalorder %s3515_s25, 3 }
   0x4   : > { %p388_p2 = pnand %p3028_p0, %p387_p1 }
   0x6   : > { %391 = sbr.rel (%p388_p2) target bundleno = 2228 (0x8b4), region = 72 }
   0xb   : > { %p431_p3 = scmp.lt.s32.totalorder %s3024_s26, 1  ;;  %s3517_s14 = smov 127   ;;  %v3525_v3 = vmov 0   ;;  %v715_v4 = vld [vmem:[%s4677_s4] sm:$0xff]  ;;  %v716_v5 = vld [vmem:[%s4677_s4 + $0x8] sm:$0xff]  ;;  %v3404_v6 = vld [vmem:[%s4684_s11 + $0x78] sm:$0xff]   ;;  %v450_v16 = vlaneseq }
   0xc   : > { %s4688_s15 = smov 111   ;;  %s4692_s16 = smov 112   ;;  %800 = vmatprep.mubr.bf16.mxu0 %v3525_v3  ;;  %3392 = vset.pattern.permute.xlu0 %v3525_v3  ;;  %v3405_v7 = vld [vmem:[%s4684_s11 + $0x38] sm:$0xff]   ;;  %v3406_v8 = vld [vmem:[%s4684_s11 + $0x70] sm:$0xff]   ;;  %v3408_v10 = vld [vmem:[%s4684_s11 + $0x68] sm:$0xff]   ;;  %vm761_vm6 = vcmask 1041408  }
   0xd   : > { %s4725_s26 = smov (!%p431_p3, %s3024_s26), 1  ;;  %s4690_s17 = smov 113   ;;  %3393 = vset.pattern.permute.xlu1 %v3525_v3  ;;  %3338 = vmatprep.subr.bf16.mxu1 %v3404_v6  ;;  %v3407_v9 = vld [vmem:[%s4684_s11 + $0x30] sm:$0xff]   ;;  %v3409_v11 = vld [vmem:[%s4684_s11 + $0x28] sm:$0xff]   ;;  %v3410_v12 = vld [vmem:[%s4684_s11 + $0x60] sm:$0xff]   ;;  %v458_v17 = vshrl.u32 %v450_v16, 7 }
   0xe   : > { %s4687_s27 = sshll.u32 %s4725_s26, 3  ;;  %s4696_s18 = smov 16   ;;  %3339 = vmatpush3.bf16.msra.mxu1 %v3405_v7  ;;  %v3411_v13 = vld [vmem:[%s4684_s11 + $0x20] sm:$0xff]   ;;  %v3412_v14 = vld [vmem:[%s4684_s11 + $0x58] sm:$0xff]   ;;  %v3682_v18 = vand.u32 127, %v450_v16  ;;  %vm757_vm9 = vcmask 293888  }
   0xf   : > { %s435_s30 = scalar_lea.vmem %s4673_s0, %s4687_s27  ;;  %s3522_s19 = smov 1   ;;  %3340 = vmatprep.subr.bf16.mxu1 %v3406_v8  ;;  %v3413_v15 = vld [vmem:[%s4684_s11 + $0x18] sm:$0xff]   ;;  %v3684_v19 = vsub.s32 0, %v458_v17  ;;  %v3686_v20 = vsub.s32 1, %v458_v17  ;;  %vm1022_vm10 = vcmask 519168   ;;  %vm986_vm11 = vcmask 1048064  }
  0x10   : > { %v442_v0 = vld [vmem:[%s435_s30] sm:$0xff]  ;;  %s4694_s20 = smov 17   ;;  %s3524_s21 = smov 15   ;;  %vm586_vm0 = vcmp.lt.s32.totalorder %v3682_v18, 127  ;;  %vm649_vm1 = vcmp.lt.s32.totalorder %v3682_v18, 112  ;;  %vm681_vm2 = vcmp.lt.s32.totalorder %v3682_v18, 111 }
  0x11   : > { %582 = vrot.lane.b32.xlu1 %v442_v0, %s3517_s14  ;;  %677 = vrot.lane.b32.xlu0 %v442_v0, %s4688_s15  ;;  %v444_v1 = vcombine.high %v442_v0, %v442_v0  ;;  %v3041_v21 = vld [vmem:[%s4674_s1 + $0x5] ss:$8 sm:$0x3]  ;;  %v3045_v26 = vld [vmem:[%s4674_s1 + $0x7] ss:$8 sm:$0x3] }
  0x12   : > { %3341 = vmatpush3.bf16.msra.mxu1 %v3407_v9  ;;  %v595_v24 = vrot.slane %v3041_v21, %v3684_v19  ;;  %v599_v25 = vrot.slane %v3041_v21, %v3686_v20  ;;  %v3047_v27 = vld [vmem:[%s4674_s1 + $0x10] ss:$8 sm:$0x3]  ;;  %v658_v32 = vrot.slane %v3045_v26, %v3684_v19  ;;  %v3043_v33 = vld [vmem:[%s4674_s1 + $0x6] ss:$8 sm:$0x3]  ;;  %v662_v36 = vrot.slane %v3045_v26, %v3686_v20 }
  0x13   : > { %v3261_v2 = vpack.c.bf16 %v444_v1, %v442_v0  ;;  %3342 = vmatprep.subr.bf16.mxu1 %v3408_v10  ;;  %v690_v37 = vrot.slane %v3047_v27, %v3684_v19  ;;  %v694_v38 = vrot.slane %v3047_v27, %v3686_v20  ;;  %vm618_vm3 = vcmp.lt.s32.totalorder %v3682_v18, 113  ;;  %v3034_v52 = vld [vmem:[%s4674_s1 + $0x1] ss:$8 sm:$0x3]  ;;  %s3526_s29 = smov 64   ;;  %s3528_s24 = smov 7  }
  0x14   : > { %v627_v42 = vrot.slane %v3043_v33, %v3684_v19  ;;  %v631_v43 = vrot.slane %v3043_v33, %v3686_v20  ;;  %vm482_vm4 = vcmp.lt.s32.totalorder %v3682_v18, 16  ;;  %v491_v60 = vrot.slane %v3034_v52, %v3684_v19  ;;  %v3036_v27 = vld [vmem:[%s4674_s1 + $0x2] ss:$8 sm:$0x3]  ;;  %s3532_s28 = smov 55   ;;  %s3533_s27 = smov 9  }
  0x15   : > { %645 = vrot.lane.b32.xlu0 %v442_v0, %s4692_s16  ;;  %584 = vrot.lane.b32.xlu1 %v444_v1, %s3517_s14  ;;  %581 = vst [vmem:[#allocation2 + $0x10] sm:$0x33] %v3261_v2  ;;  %vm545_vm5 = vcmp.lt.s32.totalorder %v3682_v18, 1  ;;  %vm452_vm7 = vcmp.lt.s32.totalorder %v3682_v18, 17  ;;  %vm514_vm8 = vcmp.lt.s32.totalorder %v3682_v18, 15  ;;  %s3540_s22 = smov 119  }
  0x16   : > { %3343 = vmatpush3.bf16.msra.mxu1 %v3409_v11  ;;  %vm1328_vm12 = vcmask 130048   ;;  %vm1438_vm13 = vcmask 523264   ;;  %s4710_s23 = smov 111   ;;  %vm2349_vm14 = vcmask 261120  }
  0x17   : > { %3344 = vmatprep.subr.bf16.mxu1 %v3410_v12  ;;  %v455_v12 = vld [vmem:[%s4674_s1] ss:$8 sm:$0x3] }
  0x18   : > { %v460_v21 = vrot.slane %v455_v12, %v3684_v19  ;;  %v464_v26 = vrot.slane %v455_v12, %v3686_v20 }
  0x19   : > { %647 = vrot.lane.b32.xlu1 %v444_v1, %s4692_s16  ;;  %679 = vrot.lane.b32.xlu0 %v444_v1, %s4688_s15  ;;  %s3527_s15 = smov 8   ;;  %s3530_s16 = smov 57  }
  0x1a   : > { %3345 = vmatpush3.bf16.msra.mxu1 %v3411_v13 }
  0x1b   : > { %3346 = vmatprep.subr.bf16.mxu1 %v3412_v14 }
  0x1d   : > { %616 = vrot.lane.b32.xlu1 %v444_v1, %s4690_s17  ;;  %614 = vrot.lane.b32.xlu0 %v442_v0, %s4690_s17  ;;  %s3539_s17 = smov 73  }
  0x1e   : > { %3347 = vmatpush3.bf16.msra.mxu1 %v3413_v15 }
  0x21   : > { %480 = vrot.lane.b32.xlu1 %v444_v1, %s4696_s18  ;;  %478 = vrot.lane.b32.xlu0 %v442_v0, %s4696_s18  ;;  %s3535_s18 = smov 121  }
  0x25   : > { %543 = vrot.lane.b32.xlu1 %v444_v1, %s3522_s19  ;;  %541 = vrot.lane.b32.xlu0 %v442_v0, %s3522_s19 }
  0x29   : > { %448 = vrot.lane.b32.xlu1 %v444_v1, %s4694_s20  ;;  %446 = vrot.lane.b32.xlu0 %v442_v0, %s4694_s20  ;;  %s3534_s20 = smov 120  }
  0x2d   : > { %512 = vrot.lane.b32.xlu1 %v444_v1, %s3524_s21  ;;  %510 = vrot.lane.b32.xlu0 %v442_v0, %s3524_s21  ;;  %v495_v0 = vrot.slane %v3034_v52, %v3686_v20  ;;  %v3038_v1 = vld [vmem:[%s4674_s1 + $0x3] ss:$8 sm:$0x3] }
  0x2e   : > { %v554_v10 = vrot.slane %v3038_v1, %v3684_v19  ;;  %v558_v11 = vrot.slane %v3038_v1, %v3686_v20 }
  0x31   : > { %719 = vperm.xlu0 %3392, %v715_v4   ;;  %724 = vperm.xlu1 %3393, %v716_v5  }
  0x83   : > { %v583_v22 = vpop.permute.xlu1 %582  ;;  %v678_v23 = vpop.permute.xlu0 %677 }
  0x87   : > { %v646_v28 = vpop.permute.xlu0 %645  ;;  %v585_v29 = vpop.permute.xlu1 %584 }
  0x88   : > { %v587_v30 = vsel %vm586_vm0, %v583_v22, %v585_v29  ;;  %v588_v31 = vsel %vm586_vm0, %v585_v29, %v583_v22 }
  0x89   : > { %v602_v34 = vmul.f32 %v595_v24, %v587_v30  ;;  %v603_v35 = vmul.f32 %v599_v25, %v588_v31 }
  0x8b   : > { %v3262_v39 = vpack.c.bf16 %v603_v35, %v602_v34  ;;  %v648_v40 = vpop.permute.xlu1 %647  ;;  %v680_v41 = vpop.permute.xlu0 %679 }
  0x8c   : > { %v650_v44 = vsel %vm649_vm1, %v646_v28, %v648_v40  ;;  %v651_v45 = vsel %vm649_vm1, %v648_v40, %v646_v28  ;;  %v682_v46 = vsel %vm681_vm2, %v678_v23, %v680_v41  ;;  %v683_v47 = vsel %vm681_vm2, %v680_v41, %v678_v23 }
  0x8d   : > { %v611_v48 = vrot.slane %v3262_v39, 6  ;;  %v665_v49 = vmul.f32 %v658_v32, %v650_v44  ;;  %v666_v50 = vmul.f32 %v662_v36, %v651_v45  ;;  %v697_v51 = vmul.f32 %v690_v37, %v682_v46 }
  0x8e   : > { %v698_v53 = vmul.f32 %v694_v38, %v683_v47  ;;  %v523_v36 = vrot.slane %v3036_v27, %v3684_v19  ;;  %v527_v41 = vrot.slane %v3036_v27, %v3686_v20 }
  0x8f   : > { %613 = vst [vmem:[#allocation2 + $0x10] sm:$0xcc] %v611_v48  ;;  %v3264_v54 = vpack.c.bf16 %v666_v50, %v665_v49  ;;  %v617_v55 = vpop.permute.xlu1 %616  ;;  %v615_v56 = vpop.permute.xlu0 %614 }
  0x90   : > { %v3265_v57 = vpack.c.bf16 %v698_v53, %v697_v51  ;;  %v619_v58 = vsel %vm618_vm3, %v615_v56, %v617_v55  ;;  %v620_v59 = vsel %vm618_vm3, %v617_v55, %v615_v56  ;;  %v3403_v53 = vld [vmem:[%s4676_s3] sm:$0xff]   ;;  %v3415_v55 = vld [vmem:[%s4684_s11 + $0x10] sm:$0xff]   ;;  %v3416_v56 = vld [vmem:[%s4684_s11 + $0x48] sm:$0xff]  }
  0x91   : > { %v674_v61 = vrot.slane %v3264_v54, 6  ;;  %v634_v62 = vmul.f32 %v627_v42, %v619_v58  ;;  %v635_v63 = vmul.f32 %v631_v43, %v620_v59  ;;  %v3414_v54 = vld [vmem:[%s4684_s11 + $0x50] sm:$0xff]   ;;  %v3418_v58 = vld [vmem:[%s4684_s11 + $0x40] sm:$0xff]  }
  0x92   : > { %707 = vst [vmem:[#allocation2 + $0x20] sm:$0x33] %v3265_v57  ;;  %3348 = vmatprep.subr.bf16.mxu1 %v3414_v54  ;;  %v3417_v57 = vld [vmem:[%s4684_s11 + $0x8] sm:$0xff]   ;;  %v3419_v59 = vld [vmem:[%s4684_s11] sm:$0xff]  }
  0x93   : > { %676 = vst [vmem:[#allocation2 + $0x18] sm:$0xcc] %v674_v61  ;;  %v3263_v2 = vpack.c.bf16 %v635_v63, %v634_v62  ;;  %v481_v4 = vpop.permute.xlu1 %480  ;;  %v479_v5 = vpop.permute.xlu0 %478  ;;  %3349 = vmatpush3.bf16.msra.mxu1 %v3415_v55 }
  0x94   : > { %v483_v6 = vsel %vm482_vm4, %v479_v5, %v481_v4  ;;  %v484_v7 = vsel %vm482_vm4, %v481_v4, %v479_v5  ;;  %3350 = vmatprep.subr.bf16.mxu1 %v3416_v56 }
  0x95   : > { %644 = vst [vmem:[#allocation2 + $0x18] sm:$0x33] %v3263_v2  ;;  %v498_v8 = vmul.f32 %v491_v60, %v484_v7  ;;  %v499_v9 = vmul.f32 %v495_v0, %v483_v6 }
  0x97   : > { %v3258_v13 = vpack.c.bf16 %v499_v9, %v498_v8  ;;  %v544_v14 = vpop.permute.xlu1 %543  ;;  %v542_v15 = vpop.permute.xlu0 %541  ;;  %3351 = vmatpush3.bf16.msra.mxu1 %v3417_v57 }
  0x98   : > { %v546_v16 = vsel %vm545_vm5, %v542_v15, %v544_v14  ;;  %v547_v17 = vsel %vm545_vm5, %v544_v14, %v542_v15  ;;  %3352 = vmatprep.subr.bf16.mxu1 %v3418_v58 }
  0x99   : > { %v507_v22 = vrot.slane %v3258_v13, 6  ;;  %v561_v23 = vmul.f32 %v554_v10, %v547_v17  ;;  %v562_v24 = vmul.f32 %v558_v11, %v546_v16  ;;  %v712_v25 = vld [vmem:[#allocation2 + $0x20] sm:$0x33] }
  0x9a   : > { %v3055_v28 = vcombine.high %v712_v25, %v712_v25  ;;  %v3054_v29 = vcombine.low %v712_v25, %v712_v25 }
  0x9b   : > { %509 = vst [vmem:[#allocation2] sm:$0xcc] %v507_v22  ;;  %v3260_v30 = vpack.c.bf16 %v562_v24, %v561_v23  ;;  %v449_v31 = vpop.permute.xlu1 %448  ;;  %v447_v32 = vpop.permute.xlu0 %446  ;;  %3353 = vmatpush3.bf16.msra.mxu1 %v3419_v59 }
  0x9c   : > { %3056 = vmatprep.subr.msk.bf16.mxu0 %vm761_vm6, %v3055_v28  ;;  %v453_v33 = vsel %vm452_vm7, %v447_v32, %v449_v31  ;;  %v454_v34 = vsel %vm452_vm7, %v449_v31, %v447_v32  ;;  %v763_v35 = vsel %vm761_vm6, %v3054_v29, 0  ;;  %v3397_v37 = vld [vmem:[#allocation2 + $0x14] ss:$8 sps:$4 sm:$0xff]   ;;  %v3399_v45 = vld [vmem:[#allocation2 + $0x10] ss:$8 sps:$4 sm:$0xff]  }
  0x9d   : > { %v570_v38 = vrot.slane %v3260_v30, 6  ;;  %v467_v39 = vmul.f32 %v460_v21, %v454_v34  ;;  %v468_v40 = vmul.f32 %v464_v26, %v453_v33  ;;  %779 = vmatpush1.bf16.msra.mxu0 %v763_v35  ;;  %v3094_v26 = vld [vmem:[%s4675_s2 + $0x7] ss:$0 sm:$0xff]  ;;  %v3091_v29 = vld [vmem:[%s4675_s2 + $0x6] ss:$0 sm:$0xff] }
  0x9e   : > { %780 = vmatprep.subr.bf16.mxu0 %v3397_v37  ;;  %v3088_v30 = vld [vmem:[%s4675_s2 + $0x5] ss:$0 sm:$0xff]  ;;  %v3083_v31 = vld [vmem:[%s4675_s2 + $0x3] ss:$0 sm:$0xff]  ;;  %v3080_v32 = vld [vmem:[%s4675_s2 + $0x2] ss:$0 sm:$0xff] }
  0x9f   : > { %572 = vst [vmem:[#allocation2 + $0x8] sm:$0xcc] %v570_v38  ;;  %v3257_v42 = vpack.c.bf16 %v468_v40, %v467_v39  ;;  %v513_v43 = vpop.permute.xlu1 %512  ;;  %v511_v44 = vpop.permute.xlu0 %510  ;;  %v3077_v33 = vld [vmem:[%s4675_s2 + $0x1] ss:$0 sm:$0xff]  ;;  %v3074_v34 = vld [vmem:[%s4675_s2] ss:$0 sm:$0xff] }
  0xa0   : > { %v515_v46 = vsel %vm514_vm8, %v511_v44, %v513_v43  ;;  %v516_v47 = vsel %vm514_vm8, %v513_v43, %v511_v44  ;;  %v3097_v35 = vld [vmem:[%s4675_s2 + $0x8] ss:$0 sm:$0xff] }
  0xa1   : > { %477 = vst [vmem:[#allocation2] sm:$0x33] %v3257_v42  ;;  %v530_v48 = vmul.f32 %v523_v36, %v516_v47  ;;  %v531_v49 = vmul.f32 %v527_v41, %v515_v46  ;;  %781 = vmatpush1.bf16.msra.mxu0 %v3399_v45 }
  0xa3   : > { %v3259_v50 = vpack.c.bf16 %v531_v49, %v530_v48 }
  0xa5   : > { %540 = vst [vmem:[#allocation2 + $0x8] sm:$0x33] %v3259_v50 }
  0xac   : > { %v3400_v51 = vld [vmem:[#allocation2 + $0x4] ss:$8 sps:$4 sm:$0xff]   ;;  %v3402_v52 = vld [vmem:[#allocation2] ss:$8 sps:$4 sm:$0xff]   ;;  %v725_v62 = vpop.permute.xlu1 %724  ;;  %v720_v63 = vpop.permute.xlu0 %719 }
  0xad   : > { %782 = vmatprep.subr.bf16.mxu0 %v3400_v51 }
  0xae   : > { %783 = vmatpush1.bf16.msra.mxu0 %v3402_v52 }
  0xaf   : > { %1335 = vmatprep.subr.bf16.mxu0 %v3525_v3 }
  0xb1   : > { %3057 = vmatmul.mubr.msk.bf16.vlgmr.msra.gmra.mxu0 %vm757_vm9, %v3403_v53 }
 0x171   : > { %v802_v60 = vpop.f32.mrf.mxu0 }
 0x172   : > { %v803_v4 = vadd.f32 %v802_v60, %v720_v63 }
 0x173   : > { %v804_v61 = vpop.f32.mrf.mxu0 }
 0x174   : > { %v805_v1 = vadd.f32 %v804_v61, %v720_v63  ;;  %v811_v10 = vmax.f32 %v803_v4, 0.0 }
 0x175   : > { %v806_v0 = vpop.f32.mrf.mxu0 }
 0x176   : > { %v807_v2 = vadd.f32 %v806_v0, %v725_v62  ;;  %v812_v8 = vmax.f32 %v805_v1, 0.0 }
 0x177   : > { %v808_v5 = vpop.f32.mrf.mxu0 }
 0x178   : > { %v809_v6 = vadd.f32 %v808_v5, %v725_v62  ;;  %v813_v7 = vmax.f32 %v807_v2, 0.0 }
 0x17a   : > { %v814_v9 = vmax.f32 %v809_v6, 0.0  ;;  %v815_v12 = vpack.c.bf16 %v813_v7, %v811_v10 }
 0x17c   : > { %v816_v11 = vpack.c.bf16 %v814_v9, %v812_v8 }
 0x17e   : > { %977 = vmatprep.mubr.bf16.mxu1 %v816_v11 }
 0x17f   : > { %978 = vmatmul.mubr.bf16.vlgmr.msra.gmra.mxu1 %v815_v12 }
 0x180   : > { %1477 = vmatprep.mubr.bf16.mxu1 %v3525_v3 }
 0x23f   : > { %v3354_v13 = vpop.f32.mrf.mxu1 }
 0x241   : > { %v3355_v14 = vpop.f32.mrf.mxu1 }
 0x242   : > { %v3356_v15 = vadd.f32 %v3355_v14, %v3354_v13 }
 0x243   : > { %v3357_v16 = vpop.f32.mrf.mxu1 }
 0x244   : > { %v3274_v17 = vpack.c.bf16 %v3356_v15, %v3356_v15  ;;  %987 = vrot.lane.b32.xlu1 %v3356_v15, %s3526_s29 }
 0x245   : > { %v3358_v21 = vpop.f32.mrf.mxu1 }
 0x246   : > { %1108 = vst.msk [vmem:[#allocation2 + $0x40] sm:$0xf] %vm1022_vm10, %v3274_v17  ;;  %v3359_v22 = vadd.f32 %v3358_v21, %v3357_v16  ;;  %v1232_v17 = vld [vmem:[%s4679_s6] sm:$0xff]  ;;  %v1233_v21 = vld [vmem:[%s4679_s6 + $0x8] sm:$0xff] }
 0x248   : > { %v3275_v23 = vpack.c.bf16 %v3359_v22, %v3359_v22  ;;  %990 = vrot.lane.b32.xlu0 %v3359_v22, %s3526_s29 }
 0x24a   : > { %1109 = vst.msk [vmem:[#allocation2 + $0x48] sm:$0xf] %vm1022_vm10, %v3275_v23  ;;  %v1234_v23 = vld [vmem:[%s4679_s6 + $0x10] sm:$0xff] }
 0x2b6   : > { %v988_v24 = vpop.permute.xlu1 %987 }
 0x2b7   : > { %v989_v25 = vsel %vm986_vm11, %v988_v24, %v3356_v15  ;;  %v1235_v24 = vld [vmem:[%s4679_s6 + $0x18] sm:$0xff] }
 0x2b8   : > { %993 = vrot.lane.b32.xlu1 %v989_v25, %s3526_s29  ;;  %v3435_v25 = vld [vmem:[%s4685_s12 + $0x30] ss:$8 sps:$4 sm:$0xff]  }
 0x2ba   : > { %v991_v27 = vpop.permute.xlu0 %990 }
 0x2bb   : > { %v992_v28 = vsel %vm986_vm11, %v991_v27, %v3359_v22  ;;  %v3440_v27 = vld [vmem:[%s4685_s12 + $0x24] ss:$8 sps:$4 sm:$0xff]  }
 0x2bc   : > { %995 = vrot.lane.b32.xlu0 %v992_v28, %s3526_s29  ;;  %1166 = vrot.lane.b32.xlu1 %v3094_v26, %s3527_s15  ;;  %s3529_s15 = smov 63   ;;  %s3536_s29 = smov 65   ;;  %v3437_v26 = vld [vmem:[%s4685_s12 + $0x34] ss:$8 sps:$4 sm:$0xff]   ;;  %v3438_v28 = vld [vmem:[%s4685_s12 + $0x20] ss:$8 sps:$4 sm:$0xff]  }
 0x2bd   : > { %1453 = vmatprep.subr.bf16.mxu1 %v3437_v26 }
 0x2be   : > { %1454 = vmatpush1.bf16.msra.mxu1 %v3435_v25 }
 0x2bf   : > { %1455 = vmatprep.subr.bf16.mxu1 %v3440_v27 }
 0x2c0   : > { %1141 = vrot.lane.b32.xlu0 %v3091_v29, %s3528_s24  ;;  %1116 = vrot.lane.b32.xlu1 %v3088_v30, %s3522_s19  ;;  %s3531_s24 = smov 56  }
 0x2c2   : > { %1456 = vmatpush1.bf16.msra.mxu1 %v3438_v28 }
 0x2c4   : > { %1081 = vrot.lane.b32.xlu0 %v3083_v31, %s3529_s15  ;;  %1056 = vrot.lane.b32.xlu1 %v3080_v32, %s3530_s16  ;;  %s3537_s15 = smov 71   ;;  %s3538_s16 = smov 72  }
 0x2c8   : > { %1031 = vrot.lane.b32.xlu0 %v3077_v33, %s3531_s24  ;;  %1005 = vrot.lane.b32.xlu1 %v3074_v34, %s3532_s28 }
 0x2cc   : > { %1191 = vrot.lane.b32.xlu0 %v3097_v35, %s3533_s27 }
 0x32a   : > { %v994_v36 = vpop.permute.xlu1 %993 }
 0x32b   : > { %v997_v37 = vsel %vm986_vm11, %v994_v36, %v3356_v15 }
 0x32e   : > { %v996_v38 = vpop.permute.xlu0 %995  ;;  %v1167_v39 = vpop.permute.xlu1 %1166 }
 0x32f   : > { %v998_v40 = vsel %vm986_vm11, %v996_v38, %v3359_v22  ;;  %v1169_v41 = vmul.f32 %v1167_v39, %v997_v37  ;;  %v3429_v22 = vld [vmem:[%s4678_s5 + $0x4] ss:$8 sps:$4 sm:$0xff]  }
 0x330   : > { %v1170_v42 = vmul.f32 %v1167_v39, %v998_v40  ;;  %3113 = vmatprep.mubr.msk.bf16.mxu0 %vm1328_vm12, %v3429_v22 }
 0x331   : > { %v3280_v43 = vpack.c.bf16 %v1169_v41, %v1169_v41 }
 0x332   : > { %v1142_v44 = vpop.permute.xlu0 %1141  ;;  %v1117_v45 = vpop.permute.xlu1 %1116  ;;  %v3281_v46 = vpack.c.bf16 %v1170_v42, %v1170_v42 }
 0x333   : > { %v1144_v47 = vmul.f32 %v1142_v44, %v997_v37  ;;  %v1145_v48 = vmul.f32 %v1142_v44, %v998_v40  ;;  %1177 = vrot.lane.b32.xlu1 %v3280_v43, %s3534_s20  ;;  %v1119_v49 = vmul.f32 %v1117_v45, %v997_v37  ;;  %v1120_v52 = vmul.f32 %v1117_v45, %v998_v40  ;;  %v3423_v44 = vld [vmem:[#allocation2 + $0x40] ss:$8 sps:$4 sm:$0xff]  }
 0x334   : > { %1179 = vrot.lane.b32.xlu0 %v3281_v46, %s3534_s20 }
 0x335   : > { %v3278_v50 = vpack.c.bf16 %v1144_v47, %v1144_v47  ;;  %v3279_v51 = vpack.c.bf16 %v1145_v48, %v1145_v48  ;;  %v3276_v55 = vpack.c.bf16 %v1119_v49, %v1119_v49  ;;  %v3277_v58 = vpack.c.bf16 %v1120_v52, %v1120_v52 }
 0x336   : > { %v1082_v53 = vpop.permute.xlu0 %1081  ;;  %v1057_v57 = vpop.permute.xlu1 %1056 }
 0x337   : > { %1152 = vrot.lane.b32.xlu1 %v3278_v50, %s3535_s18  ;;  %v1084_v54 = vmul.f32 %v1082_v53, %v997_v37  ;;  %v1085_v56 = vmul.f32 %v1082_v53, %v998_v40  ;;  %v1059_v59 = vmul.f32 %v1057_v57, %v997_v37  ;;  %v1060_v61 = vmul.f32 %v1057_v57, %v998_v40  ;;  %v3443_v57 = vld [vmem:[%s4685_s12 + $0x14] ss:$8 sps:$4 sm:$0xff]  }
 0x338   : > { %1154 = vrot.lane.b32.xlu0 %v3279_v51, %s3535_s18  ;;  %1457 = vmatprep.subr.bf16.mxu1 %v3443_v57 }
 0x339   : > { %v3272_v60 = vpack.c.bf16 %v1084_v54, %v1084_v54  ;;  %v3273_v63 = vpack.c.bf16 %v1085_v56, %v1085_v56  ;;  %v3270_v1 = vpack.c.bf16 %v1059_v59, %v1059_v59  ;;  %v3271_v5 = vpack.c.bf16 %v1060_v61, %v1060_v61  ;;  %v3431_v54 = vld [vmem:[%s4678_s5] ss:$8 sps:$4 sm:$0xff]   ;;  %v3434_v56 = vld [vmem:[%s4678_s5 + $0x10] ss:$8 sps:$4 sm:$0xff]   ;;  %v3446_v59 = vld [vmem:[%s4685_s12 + $0x4] ss:$8 sps:$4 sm:$0xff]  }
 0x33a   : > { %v1032_v62 = vpop.permute.xlu0 %1031  ;;  %v1006_v4 = vpop.permute.xlu1 %1005 }
 0x33b   : > { %1127 = vrot.lane.b32.xlu1 %v3276_v55, %s3517_s14  ;;  %v1034_v0 = vmul.f32 %v1032_v62, %v997_v37  ;;  %v1035_v2 = vmul.f32 %v1032_v62, %v998_v40  ;;  %v1008_v6 = vmul.f32 %v1006_v4, %v997_v37  ;;  %v1009_v8 = vmul.f32 %v1006_v4, %v998_v40  ;;  %v3432_v55 = vld [vmem:[%s4678_s5 + $0x14] ss:$8 sps:$4 sm:$0xff]  }
 0x33c   : > { %1129 = vrot.lane.b32.xlu0 %v3277_v58, %s3517_s14  ;;  %v3441_v58 = vld [vmem:[%s4685_s12 + $0x10] ss:$8 sps:$4 sm:$0xff]  }
 0x33d   : > { %v3268_v7 = vpack.c.bf16 %v1034_v0, %v1034_v0  ;;  %v3269_v10 = vpack.c.bf16 %v1035_v2, %v1035_v2  ;;  %v3266_v12 = vpack.c.bf16 %v1008_v6, %v1008_v6  ;;  %v3267_v14 = vpack.c.bf16 %v1009_v8, %v1009_v8  ;;  %1458 = vmatpush1.bf16.msra.mxu1 %v3441_v58 }
 0x33e   : > { %v1192_v9 = vpop.permute.xlu0 %1191  ;;  %1459 = vmatprep.subr.bf16.mxu1 %v3446_v59 }
 0x33f   : > { %1092 = vrot.lane.b32.xlu1 %v3272_v60, %s3536_s29  ;;  %v1194_v11 = vmul.f32 %v1192_v9, %v997_v37  ;;  %v1195_v13 = vmul.f32 %v1192_v9, %v998_v40  ;;  %v3444_v60 = vld [vmem:[%s4685_s12] ss:$8 sps:$4 sm:$0xff]  }
 0x340   : > { %1094 = vrot.lane.b32.xlu0 %v3273_v63, %s3536_s29 }
 0x341   : > { %v3282_v15 = vpack.c.bf16 %v1194_v11, %v1194_v11  ;;  %v3283_v16 = vpack.c.bf16 %v1195_v13, %v1195_v13  ;;  %1460 = vmatpush1.bf16.msra.mxu1 %v3444_v60  ;;  %v1522_v60 = vld [vmem:[%s4674_s1] ss:$8 sm:$0x3] }
 0x343   : > { %1067 = vrot.lane.b32.xlu1 %v3270_v1, %s3537_s15 }
 0x344   : > { %1069 = vrot.lane.b32.xlu0 %v3271_v5, %s3537_s15  ;;  %s4705_s15 = smov 16  }
 0x347   : > { %1042 = vrot.lane.b32.xlu1 %v3268_v7, %s3538_s16 }
 0x348   : > { %1044 = vrot.lane.b32.xlu0 %v3269_v10, %s3538_s16  ;;  %s4707_s16 = smov 17  }
 0x34b   : > { %1016 = vrot.lane.b32.xlu1 %v3266_v12, %s3539_s17 }
 0x34c   : > { %1018 = vrot.lane.b32.xlu0 %v3267_v14, %s3539_s17  ;;  %s4708_s17 = smov 112  }
 0x34f   : > { %1202 = vrot.lane.b32.xlu1 %v3282_v15, %s3540_s22 }
 0x350   : > { %1204 = vrot.lane.b32.xlu0 %v3283_v16, %s3540_s22  ;;  %s4709_s22 = smov 113  }
 0x353   : > { %1238 = vperm.xlu1 %3393, %v1232_v17  }
 0x354   : > { %1243 = vperm.xlu0 %3392, %v1233_v21  }
 0x357   : > { %1248 = vperm.xlu1 %3393, %v1234_v23  }
 0x358   : > { %1253 = vperm.xlu0 %3392, %v1235_v24  }
 0x3a5   : > { %v1178_v29 = vpop.permute.xlu1 %1177 }
 0x3a6   : > { %1183 = vst.msk [vmem:[#allocation2 + $0x70] sm:$0xf] %vm1022_vm10, %v1178_v29  ;;  %v1180_v30 = vpop.permute.xlu0 %1179 }
 0x3a7   : > { %1184 = vst.msk [vmem:[#allocation2 + $0x78] sm:$0xf] %vm1022_vm10, %v1180_v30 }
 0x3a9   : > { %v1153_v31 = vpop.permute.xlu1 %1152 }
 0x3aa   : > { %1158 = vst.msk [vmem:[#allocation2 + $0x60] sm:$0xf] %vm1022_vm10, %v1153_v31  ;;  %v1155_v32 = vpop.permute.xlu0 %1154 }
 0x3ab   : > { %1159 = vst.msk [vmem:[#allocation2 + $0x68] sm:$0xf] %vm1022_vm10, %v1155_v32 }
 0x3ad   : > { %v1128_v33 = vpop.permute.xlu1 %1127 }
 0x3ae   : > { %1133 = vst.msk [vmem:[#allocation2 + $0x50] sm:$0xf] %vm1022_vm10, %v1128_v33  ;;  %v1130_v34 = vpop.permute.xlu0 %1129  ;;  %v3420_v35 = vld [vmem:[#allocation2 + $0x70] ss:$8 sps:$4 sm:$0xff]  }
 0x3af   : > { %1134 = vst.msk [vmem:[#allocation2 + $0x58] sm:$0xf] %vm1022_vm10, %v1130_v34  ;;  %1336 = vmatpush1.bf16.msra.mxu0 %v3420_v35  ;;  %v3449_v35 = vld [vmem:[%s4680_s7 + $0x4] ss:$12 sps:$4 sm:$0xff]  }
 0x3b0   : > { %1337 = vmatprep.subr.bf16.mxu0 %v3525_v3 }
 0x3b1   : > { %v1093_v36 = vpop.permute.xlu1 %1092 }
 0x3b2   : > { %1098 = vst.msk [vmem:[#allocation2 + $0x30] sm:$0xf] %vm1022_vm10, %v1093_v36  ;;  %v1095_v37 = vpop.permute.xlu0 %1094  ;;  %v3421_v38 = vld [vmem:[#allocation2 + $0x60] ss:$8 sps:$4 sm:$0xff]  }
 0x3b3   : > { %1099 = vst.msk [vmem:[#allocation2 + $0x38] sm:$0xf] %vm1022_vm10, %v1095_v37  ;;  %1338 = vmatpush1.bf16.msra.mxu0 %v3421_v38  ;;  %v2142_v38 = vld [vmem:[%s4681_s8] sm:$0xff] }
 0x3b4   : > { %1339 = vmatprep.subr.bf16.mxu0 %v3525_v3 }
 0x3b5   : > { %v1068_v39 = vpop.permute.xlu1 %1067 }
 0x3b6   : > { %1073 = vst.msk [vmem:[#allocation2 + $0x20] sm:$0xf] %vm1022_vm10, %v1068_v39  ;;  %v1070_v40 = vpop.permute.xlu0 %1069  ;;  %v3422_v41 = vld [vmem:[#allocation2 + $0x50] ss:$8 sps:$4 sm:$0xff]  }
 0x3b7   : > { %1074 = vst.msk [vmem:[#allocation2 + $0x28] sm:$0xf] %vm1022_vm10, %v1070_v40  ;;  %1340 = vmatpush1.bf16.msra.mxu0 %v3422_v41  ;;  %v2143_v41 = vld [vmem:[%s4681_s8 + $0x8] sm:$0xff] }
 0x3b8   : > { %1341 = vmatprep.subr.bf16.mxu0 %v3525_v3 }
 0x3b9   : > { %v1043_v42 = vpop.permute.xlu1 %1042 }
 0x3ba   : > { %1048 = vst.msk [vmem:[#allocation2 + $0x10] sm:$0xf] %vm1022_vm10, %v1043_v42  ;;  %v1045_v43 = vpop.permute.xlu0 %1044  ;;  %v3424_v47 = vld [vmem:[#allocation2 + $0x30] ss:$8 sps:$4 sm:$0xff]  }
 0x3bb   : > { %1049 = vst.msk [vmem:[#allocation2 + $0x18] sm:$0xf] %vm1022_vm10, %v1045_v43  ;;  %1342 = vmatpush1.bf16.msra.mxu0 %v3423_v44 }
 0x3bc   : > { %1343 = vmatprep.subr.bf16.mxu0 %v3525_v3 }
 0x3bd   : > { %v1017_v45 = vpop.permute.xlu1 %1016 }
 0x3be   : > { %1023 = vst.msk [vmem:[#allocation2] sm:$0xf] %vm1022_vm10, %v1017_v45  ;;  %v1019_v46 = vpop.permute.xlu0 %1018  ;;  %v3425_v50 = vld [vmem:[#allocation2 + $0x20] ss:$8 sps:$4 sm:$0xff]  }
 0x3bf   : > { %1024 = vst.msk [vmem:[#allocation2 + $0x8] sm:$0xf] %vm1022_vm10, %v1019_v46  ;;  %1344 = vmatpush1.bf16.msra.mxu0 %v3424_v47  ;;  %v3134_v46 = vld [vmem:[%s4674_s1 + $0x2] ss:$8 sm:$0x3] }
 0x3c0   : > { %1345 = vmatprep.subr.bf16.mxu0 %v3525_v3  ;;  %v4069_v47 = vrot.slane %v3134_v46, %v3684_v19 }
 0x3c1   : > { %v1203_v48 = vpop.permute.xlu1 %1202 }
 0x3c2   : > { %1208 = vst.msk [vmem:[#allocation2 + $0x80] sm:$0xf] %vm1022_vm10, %v1203_v48  ;;  %v1205_v49 = vpop.permute.xlu0 %1204  ;;  %v3426_v51 = vld [vmem:[#allocation2 + $0x10] ss:$8 sps:$4 sm:$0xff]   ;;  %v4072_v48 = vrot.slane %v3134_v46, %v3686_v20 }
 0x3c3   : > { %1209 = vst.msk [vmem:[#allocation2 + $0x88] sm:$0xf] %vm1022_vm10, %v1205_v49  ;;  %1346 = vmatpush1.bf16.msra.mxu0 %v3425_v50 }
 0x3c4   : > { %1347 = vmatprep.subr.bf16.mxu0 %v3525_v3 }
 0x3c6   : > { %v3427_v52 = vld [vmem:[#allocation2] ss:$8 sps:$4 sm:$0xff]  }
 0x3c7   : > { %1348 = vmatpush1.bf16.msra.mxu0 %v3426_v51 }
 0x3c8   : > { %1349 = vmatprep.subr.bf16.mxu0 %v3525_v3 }
 0x3ca   : > { %v3428_v53 = vld [vmem:[#allocation2 + $0x80] ss:$8 sps:$4 sm:$0xff]  }
 0x3cb   : > { %1350 = vmatpush1.bf16.msra.mxu0 %v3427_v52 }
 0x3cc   : > { %1365 = vmatprep.subr.bf16.mxu0 %v3525_v3 }
 0x3ce   : > { %v1239_v62 = vpop.permute.xlu1 %1238 }
 0x3cf   : > { %1366 = vmatpush2.bf16.msra.mxu0 %v3428_v53  ;;  %v1244_v1 = vpop.permute.xlu0 %1243  ;;  %v3129_v53 = vld [vmem:[%s4674_s1 + $0x1] ss:$8 sm:$0x3] }
 0x3d0   : > { %v4093_v57 = vrot.slane %v3129_v53, %v3686_v20 }
 0x3d2   : > { %1368 = vmatmul.mubr.bf16.vlgmr.msra.gmra.mxu0 %v3431_v54  ;;  %v1249_v10 = vpop.permute.xlu1 %1248 }
 0x3d3   : > { %3114 = vmatprep.mubr.msk.bf16.mxu0 %vm1328_vm12, %v3432_v55  ;;  %v1254_v13 = vpop.permute.xlu0 %1253 }
 0x3da   : > { %1376 = vmatmul.mubr.bf16.gmra.mxu0 %v3434_v56  ;;  %v4090_v56 = vrot.slane %v3129_v53, %v3684_v19 }
 0x3db   : > { %2385 = vmatprep.mubr.bf16.mxu0 %v3449_v35 }
 0x492   : > { %v1369_v61 = vpop.f32.mrf.mxu0 }
 0x493   : > { %v1370_v0 = vadd.f32 %v1369_v61, %v1239_v62 }
 0x494   : > { %v1371_v63 = vpop.f32.mrf.mxu0 }
 0x495   : > { %v1384_v6 = vmax.f32 %v1370_v0, 0.0 }
 0x496   : > { %v1372_v2 = vpop.f32.mrf.mxu0 }
 0x497   : > { %v1373_v4 = vadd.f32 %v1372_v2, %v1244_v1 }
 0x498   : > { %v1374_v5 = vpop.f32.mrf.mxu0 }
 0x499   : > { %v1385_v7 = vmax.f32 %v1373_v4, 0.0  ;;  %v4113_v4 = vrot.slane %v1522_v60, %v3684_v19  ;;  %v4116_v5 = vrot.slane %v1522_v60, %v3686_v20 }
 0x49a   : > { %v1377_v8 = vpop.f32.mrf.mxu0 }
 0x49b   : > { %v1388_v9 = vpack.c.bf16 %v1385_v7, %v1384_v6  ;;  %v1378_v12 = vadd.f32 %v1377_v8, %v1249_v10  ;;  %v3158_v6 = vld [vmem:[%s4674_s1 + $0x7] ss:$8 sm:$0x3] }
 0x49c   : > { %v1379_v11 = vpop.f32.mrf.mxu0 }
 0x49d   : > { %3123 = vmatmul.mubr.msk.bf16.vlgmr.msra.gmra.mxu1 %vm1438_vm13, %v1388_v9  ;;  %v1386_v17 = vmax.f32 %v1378_v12, 0.0 }
 0x49e   : > { %v1380_v14 = vpop.f32.mrf.mxu0  ;;  %1487 = vmatprep.mubr.bf16.mxu1 %v3525_v3 }
 0x49f   : > { %v1381_v15 = vadd.f32 %v1380_v14, %v1254_v13 }
 0x4a0   : > { %v1382_v16 = vpop.f32.mrf.mxu0 }
 0x4a1   : > { %v1387_v21 = vmax.f32 %v1381_v15, 0.0 }
 0x4a3   : > { %v1389_v22 = vpack.c.bf16 %v1387_v21, %v1386_v17  ;;  %v4142_v17 = vrot.slane %v3158_v6, %v3684_v19  ;;  %v4145_v21 = vrot.slane %v3158_v6, %v3686_v20 }
 0x4a5   : > { %3124 = vmatmul.mubr.msk.bf16.gmra.mxu1 %vm1438_vm13, %v1389_v22 }
 0x4a6   : > { %2428 = vmatprep.mubr.bf16.mxu1 %v3525_v3 }
 0x55d   : > { %v3902_v23 = vpop.f32.mrf.mxu1 }
 0x55e   : > { %4702 = vst [vmem:[#allocation3_spill] sm:$0xff] %v3902_v23  ;;  %1714 = vrot.lane.b32.xlu1 %v3902_v23, %s3522_s19 }
 0x55f   : > { %v3906_v24 = vpop.f32.mrf.mxu1 }
 0x561   : > { %v3908_v25 = vpop.f32.mrf.mxu1 }
 0x562   : > { %4703 = vst [vmem:[#allocation4_spill] sm:$0xff] %v3908_v25  ;;  %1642 = vrot.lane.b32.xlu1 %v3902_v23, %s3524_s21  ;;  %1716 = vrot.lane.b32.xlu0 %v3908_v25, %s3522_s19 }
 0x563   : > { %v3914_v26 = vpop.f32.mrf.mxu1 }
 0x565   : > { %v3916_v27 = vpop.f32.mrf.mxu1 }
 0x566   : > { %4704 = vst [vmem:[#allocation5_spill] sm:$0xff] %v3916_v27  ;;  %1570 = vrot.lane.b32.xlu1 %v3902_v23, %s4705_s15  ;;  %1644 = vrot.lane.b32.xlu0 %v3908_v25, %s3524_s21 }
 0x567   : > { %v3922_v3 = vpop.f32.mrf.mxu1 }
 0x569   : > { %v3924_v28 = vpop.f32.mrf.mxu1 }
 0x56a   : > { %4706 = vst [vmem:[#allocation6_spill] sm:$0xff] %v3924_v28  ;;  %1498 = vrot.lane.b32.xlu1 %v3902_v23, %s4707_s16  ;;  %1572 = vrot.lane.b32.xlu0 %v3908_v25, %s4705_s15 }
 0x56b   : > { %v3930_v29 = vpop.f32.mrf.mxu1 }
 0x56e   : > { %1958 = vrot.lane.b32.xlu1 %v3902_v23, %s4708_s17  ;;  %1500 = vrot.lane.b32.xlu0 %v3908_v25, %s4707_s16 }
 0x572   : > { %1722 = vrot.lane.b32.xlu1 %v3906_v24, %s3522_s19  ;;  %1960 = vrot.lane.b32.xlu0 %v3908_v25, %s4708_s17 }
 0x576   : > { %1650 = vrot.lane.b32.xlu1 %v3906_v24, %s3524_s21  ;;  %1724 = vrot.lane.b32.xlu0 %v3914_v26, %s3522_s19 }
 0x57a   : > { %1578 = vrot.lane.b32.xlu1 %v3906_v24, %s4705_s15  ;;  %1652 = vrot.lane.b32.xlu0 %v3914_v26, %s3524_s21 }
 0x57e   : > { %1506 = vrot.lane.b32.xlu1 %v3906_v24, %s4707_s16  ;;  %1580 = vrot.lane.b32.xlu0 %v3914_v26, %s4705_s15 }
 0x582   : > { %1966 = vrot.lane.b32.xlu1 %v3906_v24, %s4708_s17  ;;  %1508 = vrot.lane.b32.xlu0 %v3914_v26, %s4707_s16 }
 0x586   : > { %1968 = vrot.lane.b32.xlu0 %v3914_v26, %s4708_s17  ;;  %1718 = vrot.lane.b32.xlu1 %v3916_v27, %s3522_s19 }
 0x58a   : > { %1646 = vrot.lane.b32.xlu1 %v3916_v27, %s3524_s21  ;;  %1720 = vrot.lane.b32.xlu0 %v3924_v28, %s3522_s19 }
 0x58e   : > { %1574 = vrot.lane.b32.xlu1 %v3916_v27, %s4705_s15  ;;  %1648 = vrot.lane.b32.xlu0 %v3924_v28, %s3524_s21 }
 0x592   : > { %1502 = vrot.lane.b32.xlu1 %v3916_v27, %s4707_s16  ;;  %1576 = vrot.lane.b32.xlu0 %v3924_v28, %s4705_s15 }
 0x596   : > { %1962 = vrot.lane.b32.xlu1 %v3916_v27, %s4708_s17  ;;  %1504 = vrot.lane.b32.xlu0 %v3924_v28, %s4707_s16 }
 0x59a   : > { %1726 = vrot.lane.b32.xlu1 %v3922_v3, %s3522_s19  ;;  %1964 = vrot.lane.b32.xlu0 %v3924_v28, %s4708_s17 }
 0x59e   : > { %1890 = vrot.lane.b32.xlu1 %v3916_v27, %s4709_s22  ;;  %1728 = vrot.lane.b32.xlu0 %v3930_v29, %s3522_s19 }
 0x5a2   : > { %1654 = vrot.lane.b32.xlu1 %v3922_v3, %s3524_s21  ;;  %1892 = vrot.lane.b32.xlu0 %v3924_v28, %s4709_s22 }
 0x5a6   : > { %1582 = vrot.lane.b32.xlu1 %v3922_v3, %s4705_s15  ;;  %1656 = vrot.lane.b32.xlu0 %v3930_v29, %s3524_s21 }
 0x5aa   : > { %1510 = vrot.lane.b32.xlu1 %v3922_v3, %s4707_s16  ;;  %1888 = vrot.lane.b32.xlu0 %v3908_v25, %s4709_s22 }
 0x5ae   : > { %1970 = vrot.lane.b32.xlu1 %v3922_v3, %s4708_s17  ;;  %1584 = vrot.lane.b32.xlu0 %v3930_v29, %s4705_s15 }
 0x5b2   : > { %1898 = vrot.lane.b32.xlu1 %v3922_v3, %s4709_s22  ;;  %1896 = vrot.lane.b32.xlu0 %v3914_v26, %s4709_s22 }
 0x5b6   : > { %1886 = vrot.lane.b32.xlu1 %v3902_v23, %s4709_s22  ;;  %1512 = vrot.lane.b32.xlu0 %v3930_v29, %s4707_s16 }
 0x5ba   : > { %1894 = vrot.lane.b32.xlu1 %v3906_v24, %s4709_s22  ;;  %1820 = vrot.lane.b32.xlu0 %v3924_v28, %s3517_s14 }
 0x5be   : > { %1818 = vrot.lane.b32.xlu1 %v3916_v27, %s3517_s14  ;;  %1972 = vrot.lane.b32.xlu0 %v3930_v29, %s4708_s17 }
 0x5c2   : > { %1826 = vrot.lane.b32.xlu1 %v3922_v3, %s3517_s14  ;;  %1816 = vrot.lane.b32.xlu0 %v3908_v25, %s3517_s14 }
 0x5c6   : > { %1814 = vrot.lane.b32.xlu1 %v3902_v23, %s3517_s14  ;;  %1900 = vrot.lane.b32.xlu0 %v3930_v29, %s4709_s22 }
 0x5ca   : > { %1822 = vrot.lane.b32.xlu1 %v3906_v24, %s3517_s14  ;;  %1824 = vrot.lane.b32.xlu0 %v3914_v26, %s3517_s14 }
 0x5ce   : > { %2034 = vrot.lane.b32.xlu1 %v3916_v27, %s4710_s23  ;;  %1828 = vrot.lane.b32.xlu0 %v3930_v29, %s3517_s14 }
 0x5d0   : > { %v4036_v32 = vpop.permute.xlu1 %1714 }
 0x5d2   : > { %2042 = vrot.lane.b32.xlu1 %v3922_v3, %s4710_s23  ;;  %2036 = vrot.lane.b32.xlu0 %v3924_v28, %s4710_s23 }
 0x5d4   : > { %v1643_v33 = vpop.permute.xlu1 %1642  ;;  %v4042_v34 = vpop.permute.xlu0 %1716 }
 0x5d6   : > { %2030 = vrot.lane.b32.xlu1 %v3902_v23, %s4710_s23  ;;  %2032 = vrot.lane.b32.xlu0 %v3908_v25, %s4710_s23 }
 0x5d8   : > { %v1571_v36 = vpop.permute.xlu1 %1570  ;;  %v1645_v37 = vpop.permute.xlu0 %1644 }
 0x5da   : > { %2038 = vrot.lane.b32.xlu1 %v3906_v24, %s4710_s23  ;;  %2044 = vrot.lane.b32.xlu0 %v3930_v29, %s4710_s23 }
 0x5dc   : > { %v1499_v39 = vpop.permute.xlu1 %1498  ;;  %v1573_v40 = vpop.permute.xlu0 %1572 }
 0x5de   : > { %2146 = vperm.xlu1 %3393, %v2142_v38   ;;  %2040 = vrot.lane.b32.xlu0 %v3914_v26, %s4710_s23 }
 0x5e0   : > { %v1959_v42 = vpop.permute.xlu1 %1958  ;;  %v1501_v43 = vpop.permute.xlu0 %1500 }
 0x5e2   : > { %2151 = vperm.xlu0 %3392, %v2143_v41  }
 0x5e4   : > { %v4063_v44 = vpop.permute.xlu1 %1722  ;;  %v1961_v45 = vpop.permute.xlu0 %1960 }
 0x5e5   : > { %v1730_v31 = vsel %vm545_vm5, %v4036_v32, %v4063_v44 }
 0x5e8   : > { %v1651_v49 = vpop.permute.xlu1 %1650  ;;  %v4074_v50 = vpop.permute.xlu0 %1724 }
 0x5e9   : > { %v1658_v51 = vsel %vm514_vm8, %v1643_v33, %v1651_v49  ;;  %v1662_v52 = vsel %vm514_vm8, %v1651_v49, %v1643_v33 }
 0x5ea   : > { %v4084_v54 = vmul.f32 %v4069_v47, %v1662_v52  ;;  %v4087_v55 = vmul.f32 %v4072_v48, %v1658_v51 }
 0x5ec   : > { %v1579_v58 = vpop.permute.xlu1 %1578  ;;  %v1653_v59 = vpop.permute.xlu0 %1652 }
 0x5ed   : > { %v1586_v61 = vsel %vm482_vm4, %v1571_v36, %v1579_v58  ;;  %v1590_v62 = vsel %vm482_vm4, %v1579_v58, %v1571_v36  ;;  %v1659_v63 = vsel %vm514_vm8, %v1645_v37, %v1653_v59  ;;  %v1663_v0 = vsel %vm514_vm8, %v1653_v59, %v1645_v37 }
 0x5ee   : > { %v4107_v1 = vmul.f32 %v4069_v47, %v1663_v0  ;;  %v4110_v2 = vmul.f32 %v4072_v48, %v1659_v63  ;;  %v4122_v7 = vmul.f32 %v4090_v56, %v1590_v62  ;;  %v4125_v8 = vmul.f32 %v4093_v57, %v1586_v61 }
 0x5f0   : > { %v1507_v9 = vpop.permute.xlu1 %1506  ;;  %v1581_v10 = vpop.permute.xlu0 %1580 }
 0x5f1   : > { %v1514_v11 = vsel %vm452_vm7, %v1499_v39, %v1507_v9  ;;  %v1518_v12 = vsel %vm452_vm7, %v1507_v9, %v1499_v39  ;;  %v1587_v13 = vsel %vm482_vm4, %v1573_v40, %v1581_v10  ;;  %v1591_v14 = vsel %vm482_vm4, %v1581_v10, %v1573_v40 }
 0x5f2   : > { %v4136_v15 = vmul.f32 %v4090_v56, %v1591_v14  ;;  %v4139_v16 = vmul.f32 %v4093_v57, %v1587_v13  ;;  %v4152_v35 = vmul.f32 %v4113_v4, %v1518_v12  ;;  %v4155_v36 = vmul.f32 %v4116_v5, %v1514_v11 }
 0x5f4   : > { %v1967_v37 = vpop.permute.xlu1 %1966  ;;  %v1509_v38 = vpop.permute.xlu0 %1508 }
 0x5f5   : > { %v1974_v39 = vsel %vm649_vm1, %v1959_v42, %v1967_v37  ;;  %v1978_v40 = vsel %vm649_vm1, %v1967_v37, %v1959_v42  ;;  %v1515_v41 = vsel %vm452_vm7, %v1501_v43, %v1509_v38  ;;  %v1519_v46 = vsel %vm452_vm7, %v1509_v38, %v1501_v43  ;;  %v3139_v38 = vld [vmem:[%s4674_s1 + $0x3] ss:$8 sm:$0x3] }
 0x5f6   : > { %v4166_v49 = vmul.f32 %v4142_v17, %v1974_v39  ;;  %v4169_v51 = vmul.f32 %v4145_v21, %v1978_v40  ;;  %v4172_v52 = vmul.f32 %v4113_v4, %v1519_v46  ;;  %v4175_v53 = vmul.f32 %v4116_v5, %v1515_v41 }
 0x5f7   : > { %v1731_v41 = vsel %vm545_vm5, %v4042_v34, %v4074_v50  ;;  %v1735_v46 = vsel %vm545_vm5, %v4074_v50, %v4042_v34  ;;  %v1747_v30 = vrot.slane %v3139_v38, %v3686_v20  ;;  %v1734_v34 = vsel %vm545_vm5, %v4063_v44, %v4036_v32 }
 0x5f8   : > { %v1969_v59 = vpop.permute.xlu0 %1968  ;;  %v1719_v43 = vpop.permute.xlu1 %1718 }
 0x5f9   : > { %v1975_v60 = vsel %vm649_vm1, %v1961_v45, %v1969_v59  ;;  %v1979_v61 = vsel %vm649_vm1, %v1969_v59, %v1961_v45  ;;  %v1753_v6 = vmul.f32 %v1747_v30, %v1731_v41  ;;  %v1751_v22 = vmul.f32 %v1747_v30, %v1730_v31 }
 0x5fa   : > { %v4186_v62 = vmul.f32 %v4142_v17, %v1975_v60  ;;  %v4189_v63 = vmul.f32 %v4145_v21, %v1979_v61  ;;  %v1743_v61 = vrot.slane %v3139_v38, %v3684_v19 }
 0x5fb   : > { %v3465_v31 = vpack.c.bf16 %v1753_v6, %v1751_v22  ;;  %v3153_v6 = vld [vmem:[%s4674_s1 + $0x6] ss:$8 sm:$0x3] }
 0x5fc   : > { %v1647_v9 = vpop.permute.xlu1 %1646  ;;  %v1721_v10 = vpop.permute.xlu0 %1720  ;;  %v1752_v50 = vmul.f32 %v1743_v61, %v1735_v46  ;;  %v1750_v33 = vmul.f32 %v1743_v61, %v1734_v34 }
 0x600   : > { %v1575_v11 = vpop.permute.xlu1 %1574  ;;  %v1649_v12 = vpop.permute.xlu0 %1648 }
 0x604   : > { %v4195_v13 = vpop.permute.xlu1 %1502  ;;  %v4197_v14 = vpop.permute.xlu0 %1576 }
 0x608   : > { %v1963_v45 = vpop.permute.xlu1 %1962  ;;  %v4199_v37 = vpop.permute.xlu0 %1504 }
 0x60c   : > { %v1727_v39 = vpop.permute.xlu1 %1726  ;;  %v4204_v40 = vpop.permute.xlu0 %1964 }
 0x60d   : > { %v1732_v59 = vsel %vm545_vm5, %v1719_v43, %v1727_v39  ;;  %v1736_v60 = vsel %vm545_vm5, %v1727_v39, %v1719_v43 }
 0x60e   : > { %v1754_v0 = vmul.f32 %v1743_v61, %v1736_v60  ;;  %v1755_v58 = vmul.f32 %v1747_v30, %v1732_v59 }
 0x610   : > { %v1891_v42 = vpop.permute.xlu1 %1890  ;;  %v1729_v43 = vpop.permute.xlu0 %1728 }
 0x611   : > { %v1733_v39 = vsel %vm545_vm5, %v1721_v10, %v1729_v43  ;;  %v1737_v38 = vsel %vm545_vm5, %v1729_v43, %v1721_v10 }
 0x612   : > { %v1756_v25 = vmul.f32 %v1743_v61, %v1737_v38  ;;  %v1757_v23 = vmul.f32 %v1747_v30, %v1733_v39  ;;  %v4256_v39 = vrot.slane %v3153_v6, %v3684_v19 }
 0x614   : > { %v1655_v27 = vpop.permute.xlu1 %1654  ;;  %v4232_v28 = vpop.permute.xlu0 %1892  ;;  %v3463_v41 = vpack.c.bf16 %v1757_v23, %v1755_v58  ;;  %v3464_v46 = vpack.c.bf16 %v1756_v25, %v1754_v0  ;;  %v3466_v25 = vpack.c.bf16 %v1752_v50, %v1750_v33 }
 0x615   : > { %v1660_v32 = vsel %vm514_vm8, %v1647_v9, %v1655_v27  ;;  %v1664_v44 = vsel %vm514_vm8, %v1655_v27, %v1647_v9 }
 0x616   : > { %v1682_v59 = vmul.f32 %v4069_v47, %v1664_v44  ;;  %v1683_v60 = vmul.f32 %v4072_v48, %v1660_v32  ;;  %2353 = vmatprep.subr.bf16.mxu0 %v3463_v41 }
 0x617   : > { %2354 = vmatpush1.bf16.msra.mxu0 %v3464_v46 }
 0x618   : > { %v1583_v10 = vpop.permute.xlu1 %1582  ;;  %v1657_v34 = vpop.permute.xlu0 %1656  ;;  %2355 = vmatprep.subr.bf16.mxu0 %v3465_v31 }
 0x619   : > { %v1661_v30 = vsel %vm514_vm8, %v1649_v12, %v1657_v34  ;;  %v1665_v61 = vsel %vm514_vm8, %v1657_v34, %v1649_v12  ;;  %v1588_v27 = vsel %vm482_vm4, %v1575_v11, %v1583_v10  ;;  %v1592_v58 = vsel %vm482_vm4, %v1583_v10, %v1575_v11 }
 0x61a   : > { %v1684_v43 = vmul.f32 %v4069_v47, %v1665_v61  ;;  %v1685_v23 = vmul.f32 %v4072_v48, %v1661_v30  ;;  %v1610_v47 = vmul.f32 %v4090_v56, %v1592_v58  ;;  %v1611_v48 = vmul.f32 %v4093_v57, %v1588_v27 }
 0x61b   : > { %2356 = vmatpush1.bf16.msra.mxu0 %v3466_v25  ;;  %v4259_v11 = vrot.slane %v3153_v6, %v3686_v20 }
 0x61c   : > { %v1511_v22 = vpop.permute.xlu1 %1510  ;;  %v1889_v0 = vpop.permute.xlu0 %1888  ;;  %v3467_v9 = vpack.c.bf16 %v1685_v23, %v1683_v60  ;;  %v3468_v12 = vpack.c.bf16 %v1684_v43, %v1682_v59 }
 0x61d   : > { %v1516_v34 = vsel %vm452_vm7, %v4195_v13, %v1511_v22 }
 0x61e   : > { %2357 = vmatprep.subr.bf16.mxu0 %v3467_v9 }
 0x61f   : > { %2358 = vmatpush1.bf16.msra.mxu0 %v3468_v12 }
 0x620   : > { %v1971_v33 = vpop.permute.xlu1 %1970  ;;  %v1585_v50 = vpop.permute.xlu0 %1584 }
 0x621   : > { %v1976_v38 = vsel %vm649_vm1, %v1963_v45, %v1971_v33  ;;  %v1980_v32 = vsel %vm649_vm1, %v1971_v33, %v1963_v45  ;;  %v1589_v44 = vsel %vm482_vm4, %v4197_v14, %v1585_v50  ;;  %v1593_v41 = vsel %vm482_vm4, %v1585_v50, %v4197_v14 }
 0x622   : > { %v4272_v46 = vmul.f32 %v4142_v17, %v1976_v38  ;;  %v1999_v59 = vmul.f32 %v4145_v21, %v1980_v32  ;;  %v1612_v60 = vmul.f32 %v4090_v56, %v1593_v41  ;;  %v1613_v10 = vmul.f32 %v4093_v57, %v1589_v44 }
 0x623   : > { %v4711_v45 = vpack.c.bf16 %v4110_v2, %v4087_v55  ;;  %v1520_v14 = vsel %vm452_vm7, %v1511_v22, %v4195_v13  ;;  %v4712_v2 = vpack.c.bf16 %v4107_v1, %v4084_v54  ;;  %v1539_v22 = vmul.f32 %v4116_v5, %v1516_v34 }
 0x624   : > { %v1899_v31 = vpop.permute.xlu1 %1898  ;;  %v1897_v30 = vpop.permute.xlu0 %1896  ;;  %v3469_v25 = vpack.c.bf16 %v1613_v10, %v1611_v48  ;;  %v3470_v27 = vpack.c.bf16 %v1612_v60, %v1610_v47  ;;  %v1538_v58 = vmul.f32 %v4113_v4, %v1520_v14  ;;  %v4713_v47 = vpack.c.bf16 %v4139_v16, %v4125_v8  ;;  %v3148_v16 = vld [vmem:[%s4674_s1 + $0x5] ss:$8 sm:$0x3] }
 0x625   : > { %2359 = vmatprep.subr.bf16.mxu0 %v4711_v45  ;;  %v1904_v61 = vsel %vm618_vm3, %v1891_v42, %v1899_v31  ;;  %v1908_v56 = vsel %vm618_vm3, %v1899_v31, %v1891_v42  ;;  %v1903_v55 = vsel %vm618_vm3, %v1889_v0, %v1897_v30  ;;  %v1907_v57 = vsel %vm618_vm3, %v1897_v30, %v1889_v0 }
 0x626   : > { %2360 = vmatpush1.bf16.msra.mxu0 %v4712_v2  ;;  %v4298_v13 = vmul.f32 %v4256_v39, %v1904_v61  ;;  %v4301_v43 = vmul.f32 %v4259_v11, %v1908_v56  ;;  %v4304_v23 = vmul.f32 %v4256_v39, %v1903_v55  ;;  %v4307_v42 = vmul.f32 %v4259_v11, %v1907_v57 }
 0x627   : > { %2361 = vmatprep.subr.bf16.mxu0 %v3469_v25  ;;  %v1843_v45 = vrot.slane %v3148_v16, %v3684_v19  ;;  %v1847_v34 = vrot.slane %v3148_v16, %v3686_v20  ;;  %v4715_v14 = vpack.c.bf16 %v4175_v53, %v4155_v36 }
 0x628   : > { %v1887_v54 = vpop.permute.xlu1 %1886  ;;  %v1513_v1 = vpop.permute.xlu0 %1512 }
 0x629   : > { %v1517_v0 = vsel %vm452_vm7, %v4199_v37, %v1513_v1  ;;  %v1521_v6 = vsel %vm452_vm7, %v1513_v1, %v4199_v37 }
 0x62a   : > { %v1540_v9 = vmul.f32 %v4113_v4, %v1521_v6  ;;  %v1541_v12 = vmul.f32 %v4116_v5, %v1517_v0  ;;  %2362 = vmatpush1.bf16.msra.mxu0 %v3470_v27  ;;  %v4714_v5 = vpack.c.bf16 %v4136_v15, %v4122_v7  ;;  %v3475_v27 = vpack.c.bf16 %v4189_v63, %v4169_v51 }
 0x62b   : > { %2363 = vmatprep.subr.bf16.mxu0 %v4713_v47 }
 0x62c   : > { %v1895_v48 = vpop.permute.xlu1 %1894  ;;  %v1821_v33 = vpop.permute.xlu0 %1820  ;;  %v3471_v32 = vpack.c.bf16 %v1541_v12, %v1539_v22  ;;  %v3472_v8 = vpack.c.bf16 %v1540_v9, %v1538_v58  ;;  %v3476_v58 = vpack.c.bf16 %v4186_v62, %v4166_v49  ;;  %v3163_v49 = vld [vmem:[%s4674_s1 + $0x10] ss:$8 sm:$0x3] }
 0x62d   : > { %v1902_v50 = vsel %vm618_vm3, %v1887_v54, %v1895_v48  ;;  %v1906_v38 = vsel %vm618_vm3, %v1895_v48, %v1887_v54 }
 0x62e   : > { %v4327_v37 = vmul.f32 %v4256_v39, %v1902_v50  ;;  %v1923_v4 = vmul.f32 %v4259_v11, %v1906_v38  ;;  %2364 = vmatpush1.bf16.msra.mxu0 %v4714_v5  ;;  %v2059_v5 = vrot.slane %v3163_v49, %v3684_v19 }
 0x62f   : > { %2365 = vmatprep.subr.bf16.mxu0 %v3471_v32  ;;  %v2063_v32 = vrot.slane %v3163_v49, %v3686_v20 }
 0x630   : > { %v1819_v44 = vpop.permute.xlu1 %1818  ;;  %v1973_v41 = vpop.permute.xlu0 %1972  ;;  %v3479_v48 = vpack.c.bf16 %v4307_v42, %v1923_v4 }
 0x631   : > { %v1977_v60 = vsel %vm649_vm1, %v4204_v40, %v1973_v41  ;;  %v1981_v10 = vsel %vm649_vm1, %v1973_v41, %v4204_v40 }
 0x632   : > { %v2000_v7 = vmul.f32 %v4142_v17, %v1977_v60  ;;  %v2001_v15 = vmul.f32 %v4145_v21, %v1981_v10  ;;  %2366 = vmatpush1.bf16.msra.mxu0 %v3472_v8  ;;  %v4716_v21 = vpack.c.bf16 %v4172_v52, %v4152_v35  ;;  %v3480_v8 = vpack.c.bf16 %v4304_v23, %v4327_v37 }
 0x633   : > { %2367 = vmatprep.subr.bf16.mxu0 %v4715_v14 }
 0x634   : > { %v1827_v31 = vpop.permute.xlu1 %1826  ;;  %v1817_v30 = vpop.permute.xlu0 %1816  ;;  %v3473_v55 = vpack.c.bf16 %v2000_v7, %v4272_v46  ;;  %v3474_v57 = vpack.c.bf16 %v2001_v15, %v1999_v59 }
 0x635   : > { %v1832_v61 = vsel %vm586_vm0, %v1819_v44, %v1827_v31  ;;  %v1836_v40 = vsel %vm586_vm0, %v1827_v31, %v1819_v44 }
 0x636   : > { %v1854_v17 = vmul.f32 %v1843_v45, %v1832_v61  ;;  %v1855_v56 = vmul.f32 %v1847_v34, %v1836_v40  ;;  %2368 = vmatpush1.bf16.msra.mxu0 %v4716_v21 }
 0x637   : > { %2369 = vmatprep.subr.bf16.mxu0 %v3474_v57 }
 0x638   : > { %v1815_v2 = vpop.permute.xlu1 %1814  ;;  %v1901_v36 = vpop.permute.xlu0 %1900 }
 0x639   : > { %v1905_v53 = vsel %vm618_vm3, %v4232_v28, %v1901_v36  ;;  %v1909_v25 = vsel %vm618_vm3, %v1901_v36, %v4232_v28 }
 0x63a   : > { %v1928_v35 = vmul.f32 %v4256_v39, %v1905_v53  ;;  %v1929_v52 = vmul.f32 %v4259_v11, %v1909_v25  ;;  %2370 = vmatpush2.bf16.msra.mxu0 %v3473_v55  ;;  %v4718_v25 = vld [vmem:[#allocation6_spill] sm:$0xff] }
 0x63b   : > { %2371 = vmatprep.subr.bf16.mxu0 %v3475_v27  ;;  %v4719_v27 = vld [vmem:[#allocation5_spill] sm:$0xff] }
 0x63c   : > { %v1823_v46 = vpop.permute.xlu1 %1822  ;;  %v1825_v59 = vpop.permute.xlu0 %1824  ;;  %v3477_v62 = vpack.c.bf16 %v1928_v35, %v4298_v13  ;;  %v3478_v0 = vpack.c.bf16 %v1929_v52, %v4301_v43  ;;  %v4720_v35 = vpack.c.bf16 %v4718_v25, %v4719_v27  ;;  %v3221_v27 = vld [vmem:[%s4674_s1 + $0x5] ss:$8 sm:$0x3] }
 0x63d   : > { %v1830_v22 = vsel %vm586_vm0, %v1815_v2, %v1823_v46  ;;  %v1834_v28 = vsel %vm586_vm0, %v1823_v46, %v1815_v2  ;;  %v1831_v51 = vsel %vm586_vm0, %v1817_v30, %v1825_v59  ;;  %v1835_v63 = vsel %vm586_vm0, %v1825_v59, %v1817_v30 }
 0x63e   : > { %v1850_v39 = vmul.f32 %v1843_v45, %v1830_v22  ;;  %v1851_v11 = vmul.f32 %v1847_v34, %v1834_v28  ;;  %v1852_v54 = vmul.f32 %v1843_v45, %v1831_v51  ;;  %v1853_v1 = vmul.f32 %v1847_v34, %v1835_v63  ;;  %2372 = vmatpush2.bf16.msra.mxu0 %v3476_v58  ;;  %v3447_v58 = vld [vmem:[%s4680_s7] ss:$12 sps:$4 sm:$0xff]   ;;  %v3450_v22 = vld [vmem:[%s4680_s7 + $0x8] ss:$12 sps:$4 sm:$0xff]  }
 0x63f   : > { %2373 = vmatprep.subr.bf16.mxu0 %v3478_v0  ;;  %v3485_v2 = vpack.c.bf16 %v3914_v26, %v3906_v24 }
 0x640   : > { %v2035_v6 = vpop.permute.xlu1 %2034  ;;  %v1829_v9 = vpop.permute.xlu0 %1828  ;;  %v3483_v7 = vpack.c.bf16 %v1853_v1, %v1851_v11  ;;  %v3484_v23 = vpack.c.bf16 %v1852_v54, %v1850_v39 }
 0x641   : > { %v1833_v12 = vsel %vm586_vm0, %v1821_v33, %v1829_v9  ;;  %v1837_v47 = vsel %vm586_vm0, %v1829_v9, %v1821_v33 }
 0x642   : > { %v1856_v50 = vmul.f32 %v1843_v45, %v1833_v12  ;;  %v1857_v38 = vmul.f32 %v1847_v34, %v1837_v47  ;;  %2374 = vmatpush2.bf16.msra.mxu0 %v3477_v62 }
 0x643   : > { %2375 = vmatprep.subr.bf16.mxu0 %v3479_v48 }
 0x644   : > { %v2043_v13 = vpop.permute.xlu1 %2042  ;;  %v2037_v43 = vpop.permute.xlu0 %2036  ;;  %v3481_v44 = vpack.c.bf16 %v1856_v50, %v1854_v17  ;;  %v3482_v41 = vpack.c.bf16 %v1857_v38, %v1855_v56  ;;  %v4717_v56 = vpack.c.bf16 %v3930_v29, %v3922_v3  ;;  %v4721_v3 = vld [vmem:[#allocation3_spill] sm:$0xff]  ;;  %v4722_v29 = vld [vmem:[#allocation4_spill] sm:$0xff] }
 0x645   : > { %v2048_v16 = vsel %vm681_vm2, %v2035_v6, %v2043_v13  ;;  %v2052_v33 = vsel %vm681_vm2, %v2043_v13, %v2035_v6  ;;  %v3488_v59 = vpack.c.bf16 %v4722_v29, %v4721_v3 }
 0x646   : > { %v2070_v42 = vmul.f32 %v2059_v5, %v2048_v16  ;;  %v2071_v4 = vmul.f32 %v2063_v32, %v2052_v33  ;;  %2376 = vmatpush2.bf16.msra.mxu0 %v3480_v8 }
 0x647   : > { %2377 = vmatprep.subr.bf16.mxu0 %v3482_v41 }
 0x648   : > { %v2031_v60 = vpop.permute.xlu1 %2030  ;;  %v2033_v10 = vpop.permute.xlu0 %2032 }
 0x64a   : > { %2378 = vmatpush2.bf16.msra.mxu0 %v3481_v44  ;;  %v4500_v44 = vld.sshfl [vmem:[%s4682_s9] sm:$0x33 pattern:$0x76325410] }
 0x64b   : > { %2379 = vmatprep.subr.bf16.mxu0 %v3483_v7  ;;  %v2826_v41 = vcombine.high %v4500_v44, %v4500_v44 }
 0x64c   : > { %v2039_v15 = vpop.permute.xlu1 %2038  ;;  %v2045_v45 = vpop.permute.xlu0 %2044 }
 0x64d   : > { %v2046_v37 = vsel %vm681_vm2, %v2031_v60, %v2039_v15  ;;  %v2050_v34 = vsel %vm681_vm2, %v2039_v15, %v2031_v60  ;;  %v2049_v14 = vsel %vm681_vm2, %v2037_v43, %v2045_v45  ;;  %v2053_v31 = vsel %vm681_vm2, %v2045_v45, %v2037_v43  ;;  %v2812_v60 = vld [vmem:[%s4683_s10] sm:$0xf] }
 0x64e   : > { %v2066_v30 = vmul.f32 %v2059_v5, %v2046_v37  ;;  %v2067_v61 = vmul.f32 %v2063_v32, %v2050_v34  ;;  %v2072_v40 = vmul.f32 %v2059_v5, %v2049_v14  ;;  %v2073_v17 = vmul.f32 %v2063_v32, %v2053_v31  ;;  %2380 = vmatpush2.bf16.msra.mxu0 %v3484_v23 }
 0x64f   : > { %2381 = vmatprep.subr.bf16.mxu0 %v4717_v56 }
 0x650   : > { %v2041_v21 = vpop.permute.xlu0 %2040  ;;  %v3486_v52 = vpack.c.bf16 %v2072_v40, %v2070_v42  ;;  %v3487_v46 = vpack.c.bf16 %v2073_v17, %v2071_v4  ;;  %v3227_v40 = vld [vmem:[%s4674_s1 + $0x7] ss:$8 sm:$0x3] }
 0x651   : > { %v2047_v55 = vsel %vm681_vm2, %v2033_v10, %v2041_v21  ;;  %v2051_v57 = vsel %vm681_vm2, %v2041_v21, %v2033_v10  ;;  %v2726_v21 = vrot.slane %v3227_v40, %v3684_v19 }
 0x652   : > { %v2068_v36 = vmul.f32 %v2059_v5, %v2047_v55  ;;  %v2069_v53 = vmul.f32 %v2063_v32, %v2051_v57  ;;  %2382 = vmatpush2.bf16.msra.mxu0 %v4720_v35  ;;  %2408 = vmatprep.subr.bf16.mxu1 %v3487_v46  ;;  %v2730_v55 = vrot.slane %v3227_v40, %v3686_v20  ;;  %v3224_v57 = vld [vmem:[%s4674_s1 + $0x6] ss:$8 sm:$0x3] }
 0x653   : > { %2383 = vmatprep.subr.bf16.mxu0 %v3485_v2  ;;  %2409 = vmatpush1.bf16.msra.mxu1 %v3486_v52  ;;  %v2684_v46 = vrot.slane %v3224_v57, %v3684_v19  ;;  %v2688_v3 = vrot.slane %v3224_v57, %v3686_v20 }
 0x654   : > { %v3489_v24 = vpack.c.bf16 %v2068_v36, %v2066_v30  ;;  %v3490_v26 = vpack.c.bf16 %v2069_v53, %v2067_v61 }
 0x656   : > { %2384 = vmatpush2.bf16.msra.mxu0 %v3488_v59  ;;  %2410 = vmatprep.subr.bf16.mxu1 %v3490_v26  ;;  %v2646_v26 = vrot.slane %v3221_v27, %v3686_v20 }
 0x657   : > { %2411 = vmatpush1.bf16.msra.mxu1 %v3489_v24  ;;  %v2642_v24 = vrot.slane %v3221_v27, %v3684_v19 }
 0x659   : > { %2386 = vmatmul.mubr.bf16.vlgmr.msra.gmra.mxu0 %v3447_v58  ;;  %v2147_v51 = vpop.permute.xlu1 %2146 }
 0x65a   : > { %3207 = vmatmul.mubr.msk.bf16.vlgmr.msra.gmra.mxu1 %vm2349_vm14, %v3450_v22 }
 0x65b   : > { %3252 = vmatprep.mubr.msk.bf16.mxu1 %vm1328_vm12, %v2826_v41 }
 0x65d   : > { %v2152_v62 = vpop.permute.xlu0 %2151 }
 0x719   : > { %v2387_v28 = vpop.f32.mrf.mxu0 }
 0x71a   : > { %v2388_v63 = vadd.f32 %v2387_v28, %v2147_v51  ;;  %v2430_v11 = vpop.f32.mrf.mxu1 }
 0x71b   : > { %v2389_v39 = vpop.f32.mrf.mxu0 }
 0x71c   : > { %v2390_v54 = vadd.f32 %v2389_v39, %v2147_v51  ;;  %v2431_v49 = vadd.f32 %v2430_v11, %v2388_v63  ;;  %v2432_v0 = vpop.f32.mrf.mxu1 }
 0x71d   : > { %v2391_v1 = vpop.f32.mrf.mxu0 }
 0x71e   : > { %v2392_v6 = vadd.f32 %v2391_v1, %v2152_v62  ;;  %v4423_v9 = vmax.f32 %v2431_v49, 0.0  ;;  %v2433_v47 = vadd.f32 %v2432_v0, %v2390_v54  ;;  %v2434_v48 = vpop.f32.mrf.mxu1 }
 0x71f   : > { %v2393_v12 = vpop.f32.mrf.mxu0 }
 0x720   : > { %v2394_v50 = vadd.f32 %v2393_v12, %v2152_v62  ;;  %v4425_v38 = vmax.f32 %v2433_v47, 0.0  ;;  %v2435_v5 = vadd.f32 %v2434_v48, %v2392_v6  ;;  %2709 = vrot.lane.b32.xlu1 %v4423_v9, %s4708_s17  ;;  %v2436_v32 = vpop.f32.mrf.mxu1 }
 0x722   : > { %v4429_v13 = vmax.f32 %v2435_v5, 0.0  ;;  %v2437_v43 = vadd.f32 %v2436_v32, %v2394_v50  ;;  %v3328_v8 = vpack.c.bf16 %v4425_v38, %v4423_v9 }
 0x724   : > { %v4433_v16 = vmax.f32 %v2437_v43, 0.0  ;;  %2711 = vrot.lane.b32.xlu0 %v4429_v13, %s4708_s17  ;;  %2667 = vrot.lane.b32.xlu1 %v4423_v9, %s4709_s22  ;;  %2623 = vst [vmem:[#allocation2 + $0x40] sm:$0xff] %v3328_v8  ;;  %v3491_v42 = vpack.c.bf16 %v4429_v13, %v4423_v9 }
 0x726   : > { %v3329_v33 = vpack.c.bf16 %v4433_v16, %v4429_v13  ;;  %v3492_v4 = vpack.c.bf16 %v4433_v16, %v4425_v38 }
 0x728   : > { %2669 = vrot.lane.b32.xlu0 %v4429_v13, %s4709_s22  ;;  %2625 = vrot.lane.b32.xlu1 %v4423_v9, %s3517_s14  ;;  %2624 = vst [vmem:[#allocation2 + $0x48] sm:$0xff] %v3329_v33  ;;  %v3216_v33 = vld [vmem:[%s4674_s1 + $0x3] ss:$8 sm:$0x3] }
 0x72c   : > { %2627 = vrot.lane.b32.xlu0 %v4429_v13, %s3517_s14  ;;  %2569 = vrot.lane.b32.xlu1 %v4423_v9, %s3522_s19 }
 0x730   : > { %2571 = vrot.lane.b32.xlu0 %v4429_v13, %s3522_s19  ;;  %2527 = vrot.lane.b32.xlu1 %v4423_v9, %s3524_s21 }
 0x734   : > { %2529 = vrot.lane.b32.xlu0 %v4429_v13, %s3524_s21  ;;  %2485 = vrot.lane.b32.xlu1 %v4423_v9, %s4705_s15 }
 0x738   : > { %2487 = vrot.lane.b32.xlu0 %v4429_v13, %s4705_s15  ;;  %2443 = vrot.lane.b32.xlu1 %v4423_v9, %s4707_s16 }
 0x73c   : > { %2445 = vrot.lane.b32.xlu0 %v4429_v13, %s4707_s16  ;;  %2713 = vrot.lane.b32.xlu1 %v4425_v38, %s4708_s17 }
 0x740   : > { %2715 = vrot.lane.b32.xlu0 %v4433_v16, %s4708_s17  ;;  %2671 = vrot.lane.b32.xlu1 %v4425_v38, %s4709_s22 }
 0x744   : > { %2673 = vrot.lane.b32.xlu0 %v4433_v16, %s4709_s22  ;;  %2629 = vrot.lane.b32.xlu1 %v4425_v38, %s3517_s14 }
 0x748   : > { %2631 = vrot.lane.b32.xlu0 %v4433_v16, %s3517_s14  ;;  %2751 = vrot.lane.b32.xlu1 %v4423_v9, %s4710_s23 }
 0x74c   : > { %2753 = vrot.lane.b32.xlu0 %v4429_v13, %s4710_s23  ;;  %2573 = vrot.lane.b32.xlu1 %v4425_v38, %s3522_s19 }
 0x750   : > { %2575 = vrot.lane.b32.xlu0 %v4433_v16, %s3522_s19  ;;  %2531 = vrot.lane.b32.xlu1 %v4425_v38, %s3524_s21 }
 0x754   : > { %2533 = vrot.lane.b32.xlu0 %v4433_v16, %s3524_s21  ;;  %2489 = vrot.lane.b32.xlu1 %v4425_v38, %s4705_s15 }
 0x758   : > { %2491 = vrot.lane.b32.xlu0 %v4433_v16, %s4705_s15  ;;  %2447 = vrot.lane.b32.xlu1 %v4425_v38, %s4707_s16 }
 0x75c   : > { %2449 = vrot.lane.b32.xlu0 %v4433_v16, %s4707_s16  ;;  %2755 = vrot.lane.b32.xlu1 %v4425_v38, %s4710_s23  ;;  %s4723_s16 = sshll.u32 %s4725_s26, 3 }
 0x75d   : > { %s440_s18 = scalar_lea.vmem %s4686_s13, %s4723_s16 }
 0x760   : > { %2757 = vrot.lane.b32.xlu0 %v4433_v16, %s4710_s23  ;;  %2815 = vperm.xlu1 %3393, %v2812_v60  }
 0x792   : > { %v2710_v10 = vpop.permute.xlu1 %2709 }
 0x796   : > { %v2712_v7 = vpop.permute.xlu0 %2711  ;;  %v2668_v15 = vpop.permute.xlu1 %2667 }
 0x79a   : > { %v2670_v45 = vpop.permute.xlu0 %2669  ;;  %v2626_v23 = vpop.permute.xlu1 %2625 }
 0x79e   : > { %v2628_v37 = vpop.permute.xlu0 %2627  ;;  %v4514_v34 = vpop.permute.xlu1 %2569 }
 0x7a2   : > { %v4516_v14 = vpop.permute.xlu0 %2571  ;;  %v4518_v31 = vpop.permute.xlu1 %2527 }
 0x7a6   : > { %v4520_v30 = vpop.permute.xlu0 %2529  ;;  %v4522_v61 = vpop.permute.xlu1 %2485 }
 0x7aa   : > { %v4527_v17 = vpop.permute.xlu0 %2487  ;;  %v4529_v56 = vpop.permute.xlu1 %2443 }
 0x7ae   : > { %v4536_v2 = vpop.permute.xlu0 %2445  ;;  %v2714_v36 = vpop.permute.xlu1 %2713 }
 0x7af   : > { %v2717_v53 = vsel %vm649_vm1, %v2710_v10, %v2714_v36  ;;  %v2719_v25 = vsel %vm649_vm1, %v2714_v36, %v2710_v10 }
 0x7b0   : > { %v2733_v35 = vmul.f32 %v2726_v21, %v2717_v53  ;;  %v2734_v52 = vmul.f32 %v2730_v55, %v2719_v25  ;;  %v3213_v53 = vld [vmem:[%s4674_s1 + $0x2] ss:$8 sm:$0x3] }
 0x7b2   : > { %v3334_v29 = vpack.c.bf16 %v2734_v52, %v2733_v35  ;;  %v2716_v59 = vpop.permute.xlu0 %2715  ;;  %v2672_v58 = vpop.permute.xlu1 %2671 }
 0x7b3   : > { %v2718_v22 = vsel %vm649_vm1, %v2712_v7, %v2716_v59  ;;  %v2720_v28 = vsel %vm649_vm1, %v2716_v59, %v2712_v7  ;;  %v2675_v51 = vsel %vm618_vm3, %v2668_v15, %v2672_v58  ;;  %v2677_v63 = vsel %vm618_vm3, %v2672_v58, %v2668_v15  ;;  %v3210_v58 = vld [vmem:[%s4674_s1 + $0x1] ss:$8 sm:$0x3] }
 0x7b4   : > { %2749 = vst [vmem:[#allocation2 + $0x70] sm:$0xff] %v3334_v29  ;;  %v2735_v39 = vmul.f32 %v2726_v21, %v2718_v22  ;;  %v2736_v11 = vmul.f32 %v2730_v55, %v2720_v28  ;;  %v2691_v54 = vmul.f32 %v2684_v46, %v2675_v51  ;;  %v2692_v1 = vmul.f32 %v2688_v3, %v2677_v63 }
 0x7b5   : > { %v2586_v21 = vrot.slane %v3216_v33, %v3684_v19  ;;  %v2590_v55 = vrot.slane %v3216_v33, %v3686_v20  ;;  %v2544_v29 = vrot.slane %v3213_v53, %v3684_v19  ;;  %v2548_v59 = vrot.slane %v3213_v53, %v3686_v20 }
 0x7b6   : > { %v3335_v49 = vpack.c.bf16 %v2736_v11, %v2735_v39  ;;  %v3332_v62 = vpack.c.bf16 %v2692_v1, %v2691_v54  ;;  %v2674_v0 = vpop.permute.xlu0 %2673  ;;  %v2630_v6 = vpop.permute.xlu1 %2629  ;;  %v3493_v41 = vpack.c.bf16 %v2735_v39, %v2733_v35  ;;  %v3494_v60 = vpack.c.bf16 %v2736_v11, %v2734_v52 }
 0x7b7   : > { %v2676_v12 = vsel %vm618_vm3, %v2670_v45, %v2674_v0  ;;  %v2678_v47 = vsel %vm618_vm3, %v2674_v0, %v2670_v45  ;;  %v2633_v48 = vsel %vm586_vm0, %v2626_v23, %v2630_v6  ;;  %v2635_v50 = vsel %vm586_vm0, %v2630_v6, %v2626_v23  ;;  %v2455_v0 = vld [vmem:[%s4674_s1] ss:$8 sm:$0x3] }
 0x7b8   : > { %2750 = vst [vmem:[#allocation2 + $0x78] sm:$0xff] %v3335_v49  ;;  %2707 = vst [vmem:[#allocation2 + $0x60] sm:$0xff] %v3332_v62  ;;  %v2693_v5 = vmul.f32 %v2684_v46, %v2676_v12  ;;  %v2694_v32 = vmul.f32 %v2688_v3, %v2678_v47  ;;  %v2649_v43 = vmul.f32 %v2642_v24, %v2633_v48  ;;  %2921 = vmatprep.subr.bf16.mxu1 %v3494_v60 }
 0x7b9   : > { %v2650_v8 = vmul.f32 %v2646_v26, %v2635_v50  ;;  %2922 = vmatpush1.bf16.msra.mxu1 %v3493_v41  ;;  %v2502_v11 = vrot.slane %v3210_v58, %v3684_v19 }
 0x7ba   : > { %v3333_v10 = vpack.c.bf16 %v2694_v32, %v2693_v5  ;;  %v2632_v15 = vpop.permute.xlu0 %2631  ;;  %v4568_v45 = vpop.permute.xlu1 %2751  ;;  %v3495_v25 = vpack.c.bf16 %v2693_v5, %v2691_v54  ;;  %v3496_v27 = vpack.c.bf16 %v2694_v32, %v2692_v1 }
 0x7bb   : > { %v3330_v7 = vpack.c.bf16 %v2650_v8, %v2649_v43  ;;  %v2634_v23 = vsel %vm586_vm0, %v2628_v37, %v2632_v15  ;;  %v2636_v40 = vsel %vm586_vm0, %v2632_v15, %v2628_v37 }
 0x7bc   : > { %2708 = vst [vmem:[#allocation2 + $0x68] sm:$0xff] %v3333_v10  ;;  %v2651_v57 = vmul.f32 %v2642_v24, %v2634_v23  ;;  %v2652_v36 = vmul.f32 %v2646_v26, %v2636_v40  ;;  %2923 = vmatprep.subr.bf16.mxu1 %v3496_v27 }
 0x7bd   : > { %2665 = vst [vmem:[#allocation2 + $0x50] sm:$0xff] %v3330_v7  ;;  %2924 = vmatpush1.bf16.msra.mxu1 %v3495_v25 }
 0x7be   : > { %v3331_v35 = vpack.c.bf16 %v2652_v36, %v2651_v57  ;;  %v4579_v52 = vpop.permute.xlu0 %2753  ;;  %v2574_v37 = vpop.permute.xlu1 %2573  ;;  %v3497_v22 = vpack.c.bf16 %v2651_v57, %v2649_v43  ;;  %v3498_v28 = vpack.c.bf16 %v2652_v36, %v2650_v8  ;;  %v2464_v43 = vrot.slane %v2455_v0, %v3686_v20 }
 0x7bf   : > { %v2577_v46 = vsel %vm545_vm5, %v4514_v34, %v2574_v37  ;;  %v2579_v3 = vsel %vm545_vm5, %v2574_v37, %v4514_v34  ;;  %v2506_v34 = vrot.slane %v3210_v58, %v3686_v20 }
 0x7c0   : > { %2666 = vst [vmem:[#allocation2 + $0x58] sm:$0xff] %v3331_v35  ;;  %v2593_v24 = vmul.f32 %v2586_v21, %v2579_v3  ;;  %v2594_v26 = vmul.f32 %v2590_v55, %v2577_v46  ;;  %2925 = vmatprep.subr.bf16.mxu1 %v3498_v28 }
 0x7c1   : > { %2926 = vmatpush1.bf16.msra.mxu1 %v3497_v22 }
 0x7c2   : > { %v3326_v51 = vpack.c.bf16 %v2594_v26, %v2593_v24  ;;  %v2576_v63 = vpop.permute.xlu0 %2575  ;;  %v2532_v39 = vpop.permute.xlu1 %2531  ;;  %2927 = vmatprep.subr.bf16.mxu1 %v3492_v4  ;;  %v3230_v4 = vld [vmem:[%s4674_s1 + $0x10] ss:$8 sm:$0x3] }
 0x7c3   : > { %v2578_v54 = vsel %vm545_vm5, %v4516_v14, %v2576_v63  ;;  %v2580_v1 = vsel %vm545_vm5, %v2576_v63, %v4516_v14  ;;  %v2535_v49 = vsel %vm514_vm8, %v4518_v31, %v2532_v39  ;;  %v2537_v62 = vsel %vm514_vm8, %v2532_v39, %v4518_v31 }
 0x7c4   : > { %2609 = vst [vmem:[#allocation2 + $0x30] sm:$0xff] %v3326_v51  ;;  %v2595_v6 = vmul.f32 %v2586_v21, %v2580_v1  ;;  %v2596_v12 = vmul.f32 %v2590_v55, %v2578_v54  ;;  %v2551_v47 = vmul.f32 %v2544_v29, %v2537_v62  ;;  %v2552_v48 = vmul.f32 %v2548_v59, %v2535_v49 }
 0x7c5   : > { %v2460_v31 = vrot.slane %v2455_v0, %v3684_v19  ;;  %2928 = vmatpush1.bf16.msra.mxu1 %v3491_v42  ;;  %v2768_v55 = vrot.slane %v3230_v4, %v3684_v19  ;;  %v2772_v57 = vrot.slane %v3230_v4, %v3686_v20 }
 0x7c6   : > { %v3327_v14 = vpack.c.bf16 %v2596_v12, %v2595_v6  ;;  %v3324_v50 = vpack.c.bf16 %v2552_v48, %v2551_v47  ;;  %v2534_v5 = vpop.permute.xlu0 %2533  ;;  %v2490_v32 = vpop.permute.xlu1 %2489  ;;  %v3500_v15 = vpack.c.bf16 %v2596_v12, %v2594_v26 }
 0x7c7   : > { %v2536_v8 = vsel %vm514_vm8, %v4520_v30, %v2534_v5  ;;  %v2538_v33 = vsel %vm514_vm8, %v2534_v5, %v4520_v30  ;;  %v2493_v38 = vsel %vm482_vm4, %v4522_v61, %v2490_v32  ;;  %v2495_v16 = vsel %vm482_vm4, %v2490_v32, %v4522_v61 }
 0x7c8   : > { %2610 = vst [vmem:[#allocation2 + $0x38] sm:$0xff] %v3327_v14  ;;  %2567 = vst [vmem:[#allocation2 + $0x20] sm:$0xff] %v3324_v50  ;;  %v2553_v41 = vmul.f32 %v2544_v29, %v2538_v33  ;;  %v2554_v60 = vmul.f32 %v2548_v59, %v2536_v8  ;;  %v2509_v10 = vmul.f32 %v2502_v11, %v2495_v16  ;;  %2929 = vmatprep.subr.bf16.mxu1 %v3500_v15 }
 0x7c9   : > { %v2510_v7 = vmul.f32 %v2506_v34, %v2493_v38  ;;  %v3499_v30 = vpack.c.bf16 %v2595_v6, %v2593_v24 }
 0x7ca   : > { %v3325_v23 = vpack.c.bf16 %v2554_v60, %v2553_v41  ;;  %v2492_v21 = vpop.permute.xlu0 %2491  ;;  %v2448_v61 = vpop.permute.xlu1 %2447  ;;  %v3501_v27 = vpack.c.bf16 %v2553_v41, %v2551_v47  ;;  %v3502_v35 = vpack.c.bf16 %v2554_v60, %v2552_v48 }
 0x7cb   : > { %v3322_v40 = vpack.c.bf16 %v2510_v7, %v2509_v10  ;;  %v2494_v36 = vsel %vm482_vm4, %v4527_v17, %v2492_v21  ;;  %v2496_v53 = vsel %vm482_vm4, %v2492_v21, %v4527_v17  ;;  %v2451_v9 = vsel %vm452_vm7, %v4529_v56, %v2448_v61  ;;  %2930 = vmatpush1.bf16.msra.mxu1 %v3499_v30 }
 0x7cc   : > { %v2453_v13 = vsel %vm452_vm7, %v2448_v61, %v4529_v56  ;;  %2568 = vst [vmem:[#allocation2 + $0x28] sm:$0xff] %v3325_v23  ;;  %v2511_v19 = vmul.f32 %v2502_v11, %v2496_v53  ;;  %v2512_v20 = vmul.f32 %v2506_v34, %v2494_v36  ;;  %v2468_v25 = vmul.f32 %v2464_v43, %v2451_v9 }
 0x7cd   : > { %2525 = vst [vmem:[#allocation2 + $0x10] sm:$0xff] %v3322_v40  ;;  %v2467_v42 = vmul.f32 %v2460_v31, %v2453_v13  ;;  %2931 = vmatprep.subr.bf16.mxu1 %v3502_v35 }
 0x7ce   : > { %v3323_v37 = vpack.c.bf16 %v2512_v20, %v2511_v19  ;;  %v2450_v46 = vpop.permute.xlu0 %2449  ;;  %v2756_v3 = vpop.permute.xlu1 %2755  ;;  %v3503_v51 = vpack.c.bf16 %v2511_v19, %v2509_v10  ;;  %v3504_v63 = vpack.c.bf16 %v2512_v20, %v2510_v7 }
 0x7cf   : > { %v3320_v17 = vpack.c.bf16 %v2468_v25, %v2467_v42  ;;  %v2452_v29 = vsel %vm452_vm7, %v4536_v2, %v2450_v46  ;;  %v2454_v56 = vsel %vm452_vm7, %v2450_v46, %v4536_v2  ;;  %v2759_v59 = vsel %vm681_vm2, %v4568_v45, %v2756_v3  ;;  %2932 = vmatpush1.bf16.msra.mxu1 %v3501_v27 }
 0x7d0   : > { %v2761_v58 = vsel %vm681_vm2, %v2756_v3, %v4568_v45  ;;  %2526 = vst [vmem:[#allocation2 + $0x18] sm:$0xff] %v3323_v37  ;;  %v2469_v24 = vmul.f32 %v2460_v31, %v2454_v56  ;;  %v2470_v26 = vmul.f32 %v2464_v43, %v2452_v29  ;;  %v2775_v22 = vmul.f32 %v2768_v55, %v2759_v59 }
 0x7d1   : > { %2483 = vst [vmem:[#allocation2] sm:$0xff] %v3320_v17  ;;  %v2776_v28 = vmul.f32 %v2772_v57, %v2761_v58  ;;  %2933 = vmatprep.subr.bf16.mxu1 %v3504_v63 }
 0x7d2   : > { %v3321_v39 = vpack.c.bf16 %v2470_v26, %v2469_v24  ;;  %v2758_v11 = vpop.permute.xlu0 %2757  ;;  %v3505_v49 = vpack.c.bf16 %v2469_v24, %v2467_v42  ;;  %v3506_v62 = vpack.c.bf16 %v2470_v26, %v2468_v25 }
 0x7d3   : > { %v3336_v2 = vpack.c.bf16 %v2776_v28, %v2775_v22  ;;  %v2760_v34 = vsel %vm681_vm2, %v4579_v52, %v2758_v11  ;;  %v2762_v45 = vsel %vm681_vm2, %v2758_v11, %v4579_v52  ;;  %2934 = vmatpush1.bf16.msra.mxu1 %v3503_v51 }
 0x7d4   : > { %2484 = vst [vmem:[#allocation2 + $0x8] sm:$0xff] %v3321_v39  ;;  %v2777_v54 = vmul.f32 %v2768_v55, %v2760_v34  ;;  %v2778_v1 = vmul.f32 %v2772_v57, %v2762_v45  ;;  %2935 = vmatprep.subr.bf16.mxu1 %v3506_v62 }
 0x7d5   : > { %2791 = vst [vmem:[#allocation2 + $0x80] sm:$0xff] %v3336_v2 }
 0x7d6   : > { %v3337_v0 = vpack.c.bf16 %v2778_v1, %v2777_v54  ;;  %v3507_v6 = vpack.c.bf16 %v2777_v54, %v2775_v22  ;;  %v3508_v12 = vpack.c.bf16 %v2778_v1, %v2776_v28 }
 0x7d7   : > { %2936 = vmatpush1.bf16.msra.mxu1 %v3505_v49 }
 0x7d8   : > { %2792 = vst [vmem:[#allocation2 + $0x88] sm:$0xff] %v3337_v0  ;;  %2951 = vmatprep.subr.bf16.mxu1 %v3508_v12 }
 0x7db   : > { %2952 = vmatpush2.bf16.msra.mxu1 %v3507_v6  ;;  %v2816_v18 = vpop.permute.xlu1 %2815 }
 0x7de   : > { %2954 = vmatmul.mubr.bf16.vlgmr.msra.gmra.mxu1 %v4500_v44 }
 0x89e   : > { %v2955_v52 = vpop.f32.mrf.mxu1 }
 0x89f   : > { %v2956_v47 = vadd.f32 %v2955_v52, %v2816_v18 }
 0x8a0   : > { %v2957_v48 = vpop.f32.mrf.mxu1 }
 0x8a1   : > { %v2958_v14 = vadd.f32 %v2957_v48, %v2816_v18  ;;  %3451 = vtanh.f32 %v2956_v47 }
 0x8a2   : > { %v2959_v50 = vpop.f32.mrf.mxu1 }
 0x8a3   : > { %3453 = vtanh.f32 %v2958_v14 }
 0x8a4   : > { %v2960_v5 = vpop.f32.mrf.mxu1 }
 0x8ae   : > { %v3452_v32 = vpop.eup %3451 }
 0x8b0   : > { %v3454_v31 = vpop.eup %3453 }
 0x8b1   : > { %v2966_v43 = vcombine.low %v3452_v32, %v3454_v31 }
 0x8b3   : > { %2968 = vst [vmem:[%s440_s18] sm:$0xff] %v2966_v43 }
 0x8b4 PF: > { %s23_s25 = sadd.s32 1, %s3515_s25  }
 0x8b5   : > { %p20_p4 = scmp.ge.s32.totalorder %s23_s25, 4  }
 0x8b7   :  { %22 = sbr.rel (!%p20_p4) target bundleno = 1 (0x1), region = 109 }

</bundles_post_ra>
